<compile_context>
chip_gen: v7x
topology: tpu7x:2x2x1
jax: 0.10.0
libtpu: 0.0.40
codegen_flags: <defaults>
</compile_context>

<pallas_src>
import functools

import jax
import jax.numpy as jnp
from jax.experimental import pallas as pl
from jax.experimental.pallas import tpu as pltpu  # noqa: F401  (TPU backend)


def _gru_fc_kernel(num_layers, B, T, H, *refs):
    # refs = [x, (wi, wh, b_gi, b_hn) * num_layers, fc_w, fc_b, out]
    x_ref = refs[0]
    layer_refs = refs[1:1 + 4 * num_layers]
    fc_w_ref = refs[1 + 4 * num_layers]
    fc_b_ref = refs[2 + 4 * num_layers]
    out_ref = refs[3 + 4 * num_layers]

    I = x_ref.shape[2]

    # (B, T, I) -> time-major flat (T*B, I) with row index t*B + b.
    # Pure static 2D row slices + one concat; done once, entirely in VMEM/vregs.
    x2d = x_ref[...].reshape(B * T, I)            # B-major rows: b*T + t
    inp_flat = jnp.concatenate(
        [x2d[b * T + t: b * T + t + 1, :] for t in range(T) for b in range(B)],
        axis=0,
    )                                             # (T*B, I)

    h_last = None
    for l in range(num_layers):
        wi_ref, wh_ref, bgi_ref, bhn_ref = layer_refs[4 * l: 4 * l + 4]
        wh = wh_ref[...]                                    # (H, 3H)
        bhn = jnp.broadcast_to(bhn_ref[...], (B, H))        # hoisted broadcast

        # Input-side gate pre-activations for ALL timesteps: one MXU matmul,
        # one bias add (r/z biases pre-merged, b_in folded in).
        gi_all = (
            jnp.dot(inp_flat, wi_ref[...], preferred_element_type=jnp.float32)
            + bgi_ref[...]
        )                                                   # (T*B, 3H)

        h = jnp.zeros((B, H), jnp.float32)                  # h0 = 0 (as in module)
        outs = []
        for t in range(T):                                  # fully unrolled
            gi_t = gi_all[t * B:(t + 1) * B, :]             # (B, 3H) static slice
            gh = jnp.dot(h, wh, preferred_element_type=jnp.float32)   # (B, 3H)
            r = jax.nn.sigmoid(gi_t[:, :H] + gh[:, :H])
            z = jax.nn.sigmoid(gi_t[:, H:2 * H] + gh[:, H:2 * H])
            n = jnp.tanh(gi_t[:, 2 * H:] + r * (gh[:, 2 * H:] + bhn))
            h = n + z * (h - n)                             # == (1-z)*n + z*h
            outs.append(h)
        h_last = h
        inp_flat = jnp.concatenate(outs, axis=0)            # (T*B, H), time-major

    # fc applied only to the last-timestep output of the top layer.
    out_ref[...] = (
        jnp.dot(h_last, fc_w_ref[...], preferred_element_type=jnp.float32)
        + fc_b_ref[...]
    )


def pack_gru_layer(w_ih, w_hh, b_ih, b_hh):
    """torch.nn.GRU per-layer params (gate order r, z, n) -> kernel layout."""
    H = w_hh.shape[1]
    wi = jnp.transpose(w_ih)                                # (in, 3H)
    wh = jnp.transpose(w_hh)                                # (H, 3H)
    # r/z biases merge exactly (sigmoid(gi+gh+bi+bh)); b_in rides with gi.
    b_gi = jnp.concatenate(
        [b_ih[:2 * H] + b_hh[:2 * H], b_ih[2 * H:]]
    ).reshape(1, 3 * H)
    b_hn = b_hh[2 * H:].reshape(1, H)                       # stays inside r*(gh_n+b_hn)
    return wi, wh, b_gi, b_hn


def stock_model_gru_forward(x, packed_layers, fc_w, fc_b):
    """x: (B, T, I) f32; packed_layers: [(wi, wh, b_gi, b_hn)]; returns (B, C)."""
    B, T, _ = x.shape
    num_layers = len(packed_layers)
    H = packed_layers[0][1].shape[0]
    C = fc_w.shape[-1]

    inputs = [x]
    for p in packed_layers:
        inputs.extend(p)
    inputs += [fc_w, fc_b]

    kernel = functools.partial(_gru_fc_kernel, num_layers, B, T, H)
    # No grid: every operand is a single full VMEM block (default BlockSpecs),
    # so there is exactly one kernel invocation and zero per-step pipeline cost.
    return pl.pallas_call(
        kernel,
        out_shape=jax.ShapeDtypeStruct((B, C), jnp.float32),
    )(*inputs)


def stock_model_gru_reference(x, raw_layers, fc_w_t, fc_b):
    """Pure-JAX reference matching torch.nn.GRU(batch_first=True) + Linear."""
    B, T, _ = x.shape
    H = raw_layers[0][1].shape[1]
    seq = x
    h_top = None
    for (w_ih, w_hh, b_ih, b_hh) in raw_layers:
        h = jnp.zeros((B, H), jnp.float32)
        outs = []
        for t in range(T):
            gi = seq[:, t, :] @ w_ih.T + b_ih
            gh = h @ w_hh.T + b_hh
            r = jax.nn.sigmoid(gi[:, :H] + gh[:, :H])
            z = jax.nn.sigmoid(gi[:, H:2 * H] + gh[:, H:2 * H])
            n = jnp.tanh(gi[:, 2 * H:] + r * gh[:, 2 * H:])
            h = (1.0 - z) * n + z * h
            outs.append(h)
        seq = jnp.stack(outs, axis=1)
        h_top = h
    return h_top @ fc_w_t.T + fc_b


if __name__ == "__main__":
    input_size, hidden_size, num_layers, num_classes = 8, 32, 2, 4
    batch, seq_len = 2, 8

    bound = 1.0 / float(hidden_size) ** 0.5

    def u(k, shape):
        return jax.random.uniform(k, shape, jnp.float32, minval=-bound, maxval=bound)

    key = jax.random.PRNGKey(0)
    key, xk = jax.random.split(key)
    x = jax.random.normal(xk, (batch, seq_len, input_size), jnp.float32)

    # torch.nn.GRU-style raw parameters (gate order r, z, n).
    raw_layers = []
    for l in range(num_layers):
        in_dim = input_size if l == 0 else hidden_size
        key, k1, k2, k3, k4 = jax.random.split(key, 5)
        raw_layers.append((
            u(k1, (3 * hidden_size, in_dim)),        # weight_ih_l{l}
            u(k2, (3 * hidden_size, hidden_size)),   # weight_hh_l{l}
            u(k3, (3 * hidden_size,)),               # bias_ih_l{l}
            u(k4, (3 * hidden_size,)),               # bias_hh_l{l}
        ))
    key, kw, kb = jax.random.split(key, 3)
    fc_w_t = u(kw, (num_classes, hidden_size))       # torch Linear weight (out, in)
    fc_b = u(kb, (num_classes,))

    packed = [pack_gru_layer(*p) for p in raw_layers]
    out = stock_model_gru_forward(
        x, packed, jnp.transpose(fc_w_t), fc_b.reshape(1, num_classes)
    )
    out = jax.block_until_ready(out)

    ref = stock_model_gru_reference(x, raw_layers, fc_w_t, fc_b)
    assert out.shape == (batch, num_classes)
    assert jnp.allclose(out, ref, rtol=1e-4, atol=1e-4), (out, ref)

    print("KERNEL_OK")
</pallas_src>

<mosaic_0001>
module attributes {stable_mosaic.version = 11 : i64} {
  func.func @_gru_fc_kernel(%arg0: memref<2x8x8xf32, #tpu.memory_space<vmem>>, %arg1: memref<8x96xf32, #tpu.memory_space<vmem>>, %arg2: memref<32x96xf32, #tpu.memory_space<vmem>>, %arg3: memref<1x96xf32, #tpu.memory_space<vmem>>, %arg4: memref<1x32xf32, #tpu.memory_space<vmem>>, %arg5: memref<32x96xf32, #tpu.memory_space<vmem>>, %arg6: memref<32x96xf32, #tpu.memory_space<vmem>>, %arg7: memref<1x96xf32, #tpu.memory_space<vmem>>, %arg8: memref<1x32xf32, #tpu.memory_space<vmem>>, %arg9: memref<32x4xf32, #tpu.memory_space<vmem>>, %arg10: memref<1x4xf32, #tpu.memory_space<vmem>>, %arg11: memref<2x4xf32, #tpu.memory_space<vmem>>) attributes {dimension_semantics = [], scalar_prefetch = 0 : i64, scratch_operands = 0 : i64, tpu.core_type = #tpu.core_type<tc>} {
    %c0 = arith.constant 0 : index
    %c0_0 = arith.constant 0 : index
    %c0_1 = arith.constant 0 : index
    %0 = vector.load %arg0[%c0, %c0_0, %c0_1] : memref<2x8x8xf32, #tpu.memory_space<vmem>>, vector<2x8x8xf32>
    %1 = vector.shape_cast %0 : vector<2x8x8xf32> to vector<16x8xf32>
    %2 = vector.extract_strided_slice %1 {offsets = [0, 0], sizes = [1, 8], strides = [1, 1]} : vector<16x8xf32> to vector<1x8xf32>
    %3 = vector.extract_strided_slice %1 {offsets = [8, 0], sizes = [1, 8], strides = [1, 1]} : vector<16x8xf32> to vector<1x8xf32>
    %4 = vector.extract_strided_slice %1 {offsets = [1, 0], sizes = [1, 8], strides = [1, 1]} : vector<16x8xf32> to vector<1x8xf32>
    %5 = vector.extract_strided_slice %1 {offsets = [9, 0], sizes = [1, 8], strides = [1, 1]} : vector<16x8xf32> to vector<1x8xf32>
    %6 = vector.extract_strided_slice %1 {offsets = [2, 0], sizes = [1, 8], strides = [1, 1]} : vector<16x8xf32> to vector<1x8xf32>
    %7 = vector.extract_strided_slice %1 {offsets = [10, 0], sizes = [1, 8], strides = [1, 1]} : vector<16x8xf32> to vector<1x8xf32>
    %8 = vector.extract_strided_slice %1 {offsets = [3, 0], sizes = [1, 8], strides = [1, 1]} : vector<16x8xf32> to vector<1x8xf32>
    %9 = vector.extract_strided_slice %1 {offsets = [11, 0], sizes = [1, 8], strides = [1, 1]} : vector<16x8xf32> to vector<1x8xf32>
    %10 = vector.extract_strided_slice %1 {offsets = [4, 0], sizes = [1, 8], strides = [1, 1]} : vector<16x8xf32> to vector<1x8xf32>
    %11 = vector.extract_strided_slice %1 {offsets = [12, 0], sizes = [1, 8], strides = [1, 1]} : vector<16x8xf32> to vector<1x8xf32>
    %12 = vector.extract_strided_slice %1 {offsets = [5, 0], sizes = [1, 8], strides = [1, 1]} : vector<16x8xf32> to vector<1x8xf32>
    %13 = vector.extract_strided_slice %1 {offsets = [13, 0], sizes = [1, 8], strides = [1, 1]} : vector<16x8xf32> to vector<1x8xf32>
    %14 = vector.extract_strided_slice %1 {offsets = [6, 0], sizes = [1, 8], strides = [1, 1]} : vector<16x8xf32> to vector<1x8xf32>
    %15 = vector.extract_strided_slice %1 {offsets = [14, 0], sizes = [1, 8], strides = [1, 1]} : vector<16x8xf32> to vector<1x8xf32>
    %16 = vector.extract_strided_slice %1 {offsets = [7, 0], sizes = [1, 8], strides = [1, 1]} : vector<16x8xf32> to vector<1x8xf32>
    %17 = vector.extract_strided_slice %1 {offsets = [15, 0], sizes = [1, 8], strides = [1, 1]} : vector<16x8xf32> to vector<1x8xf32>
    %18 = tpu.concatenate %2, %3, %4, %5, %6, %7, %8, %9, %10, %11, %12, %13, %14, %15, %16, %17 in 0 : vector<1x8xf32>, vector<1x8xf32>, vector<1x8xf32>, vector<1x8xf32>, vector<1x8xf32>, vector<1x8xf32>, vector<1x8xf32>, vector<1x8xf32>, vector<1x8xf32>, vector<1x8xf32>, vector<1x8xf32>, vector<1x8xf32>, vector<1x8xf32>, vector<1x8xf32>, vector<1x8xf32>, vector<1x8xf32> -> vector<16x8xf32>
    %c0_2 = arith.constant 0 : index
    %c0_3 = arith.constant 0 : index
    %19 = vector.load %arg2[%c0_2, %c0_3] : memref<32x96xf32, #tpu.memory_space<vmem>>, vector<32x96xf32>
    %c0_4 = arith.constant 0 : index
    %c0_5 = arith.constant 0 : index
    %20 = vector.load %arg4[%c0_4, %c0_5] : memref<1x32xf32, #tpu.memory_space<vmem>>, vector<1x32xf32>
    %21 = vector.shape_cast %20 : vector<1x32xf32> to vector<1x32xf32>
    %22 = vector.broadcast %21 : vector<1x32xf32> to vector<2x32xf32>
    %c0_6 = arith.constant 0 : index
    %c0_7 = arith.constant 0 : index
    %23 = vector.load %arg1[%c0_6, %c0_7] : memref<8x96xf32, #tpu.memory_space<vmem>>, vector<8x96xf32>
    %cst = arith.constant dense<0.000000e+00> : vector<16x96xf32>
    %24 = tpu.matmul %18, %23, %cst {dimension_numbers = #tpu.dot_dimension_numbers<[1], [0], [0], [1], [0, 0, 1, 1], [], []>} : vector<16x8xf32>, vector<8x96xf32>, vector<16x96xf32> -> vector<16x96xf32>
    %c0_8 = arith.constant 0 : index
    %c0_9 = arith.constant 0 : index
    %25 = vector.load %arg3[%c0_8, %c0_9] : memref<1x96xf32, #tpu.memory_space<vmem>>, vector<1x96xf32>
    %26 = vector.broadcast %25 : vector<1x96xf32> to vector<16x96xf32>
    %27 = arith.addf %24, %26 : vector<16x96xf32>
    %cst_10 = arith.constant 0.000000e+00 : f32
    %28 = vector.broadcast %cst_10 : f32 to vector<2x32xf32>
    %29 = vector.extract_strided_slice %27 {offsets = [0, 0], sizes = [2, 96], strides = [1, 1]} : vector<16x96xf32> to vector<2x96xf32>
    %cst_11 = arith.constant dense<0.000000e+00> : vector<2x96xf32>
    %30 = tpu.matmul %28, %19, %cst_11 {dimension_numbers = #tpu.dot_dimension_numbers<[1], [0], [0], [1], [0, 0, 1, 1], [], []>} : vector<2x32xf32>, vector<32x96xf32>, vector<2x96xf32> -> vector<2x96xf32>
    %31 = vector.extract_strided_slice %29 {offsets = [0, 0], sizes = [2, 32], strides = [1, 1]} : vector<2x96xf32> to vector<2x32xf32>
    %32 = vector.extract_strided_slice %30 {offsets = [0, 0], sizes = [2, 32], strides = [1, 1]} : vector<2x96xf32> to vector<2x32xf32>
    %33 = arith.addf %31, %32 : vector<2x32xf32>
    %34 = arith.negf %33 : vector<2x32xf32>
    %35 = math.exp %34 : vector<2x32xf32>
    %cst_12 = arith.constant 1.000000e+00 : f32
    %36 = vector.broadcast %cst_12 : f32 to vector<2x32xf32>
    %37 = arith.addf %36, %35 : vector<2x32xf32>
    %38 = arith.divf %36, %37 : vector<2x32xf32>
    %39 = vector.extract_strided_slice %29 {offsets = [0, 32], sizes = [2, 32], strides = [1, 1]} : vector<2x96xf32> to vector<2x32xf32>
    %40 = vector.extract_strided_slice %30 {offsets = [0, 32], sizes = [2, 32], strides = [1, 1]} : vector<2x96xf32> to vector<2x32xf32>
    %41 = arith.addf %39, %40 : vector<2x32xf32>
    %42 = arith.negf %41 : vector<2x32xf32>
    %43 = math.exp %42 : vector<2x32xf32>
    %cst_13 = arith.constant 1.000000e+00 : f32
    %44 = vector.broadcast %cst_13 : f32 to vector<2x32xf32>
    %45 = arith.addf %44, %43 : vector<2x32xf32>
    %46 = arith.divf %44, %45 : vector<2x32xf32>
    %47 = vector.extract_strided_slice %29 {offsets = [0, 64], sizes = [2, 32], strides = [1, 1]} : vector<2x96xf32> to vector<2x32xf32>
    %48 = vector.extract_strided_slice %30 {offsets = [0, 64], sizes = [2, 32], strides = [1, 1]} : vector<2x96xf32> to vector<2x32xf32>
    %49 = arith.addf %48, %22 : vector<2x32xf32>
    %50 = arith.mulf %38, %49 : vector<2x32xf32>
    %51 = arith.addf %47, %50 : vector<2x32xf32>
    %52 = math.tanh %51 : vector<2x32xf32>
    %53 = arith.subf %28, %52 : vector<2x32xf32>
    %54 = arith.mulf %46, %53 : vector<2x32xf32>
    %55 = arith.addf %52, %54 : vector<2x32xf32>
    %56 = vector.extract_strided_slice %27 {offsets = [2, 0], sizes = [2, 96], strides = [1, 1]} : vector<16x96xf32> to vector<2x96xf32>
    %cst_14 = arith.constant dense<0.000000e+00> : vector<2x96xf32>
    %57 = tpu.matmul %55, %19, %cst_14 {dimension_numbers = #tpu.dot_dimension_numbers<[1], [0], [0], [1], [0, 0, 1, 1], [], []>} : vector<2x32xf32>, vector<32x96xf32>, vector<2x96xf32> -> vector<2x96xf32>
    %58 = vector.extract_strided_slice %56 {offsets = [0, 0], sizes = [2, 32], strides = [1, 1]} : vector<2x96xf32> to vector<2x32xf32>
    %59 = vector.extract_strided_slice %57 {offsets = [0, 0], sizes = [2, 32], strides = [1, 1]} : vector<2x96xf32> to vector<2x32xf32>
    %60 = arith.addf %58, %59 : vector<2x32xf32>
    %61 = arith.negf %60 : vector<2x32xf32>
    %62 = math.exp %61 : vector<2x32xf32>
    %cst_15 = arith.constant 1.000000e+00 : f32
    %63 = vector.broadcast %cst_15 : f32 to vector<2x32xf32>
    %64 = arith.addf %63, %62 : vector<2x32xf32>
    %65 = arith.divf %63, %64 : vector<2x32xf32>
    %66 = vector.extract_strided_slice %56 {offsets = [0, 32], sizes = [2, 32], strides = [1, 1]} : vector<2x96xf32> to vector<2x32xf32>
    %67 = vector.extract_strided_slice %57 {offsets = [0, 32], sizes = [2, 32], strides = [1, 1]} : vector<2x96xf32> to vector<2x32xf32>
    %68 = arith.addf %66, %67 : vector<2x32xf32>
    %69 = arith.negf %68 : vector<2x32xf32>
    %70 = math.exp %69 : vector<2x32xf32>
    %cst_16 = arith.constant 1.000000e+00 : f32
    %71 = vector.broadcast %cst_16 : f32 to vector<2x32xf32>
    %72 = arith.addf %71, %70 : vector<2x32xf32>
    %73 = arith.divf %71, %72 : vector<2x32xf32>
    %74 = vector.extract_strided_slice %56 {offsets = [0, 64], sizes = [2, 32], strides = [1, 1]} : vector<2x96xf32> to vector<2x32xf32>
    %75 = vector.extract_strided_slice %57 {offsets = [0, 64], sizes = [2, 32], strides = [1, 1]} : vector<2x96xf32> to vector<2x32xf32>
    %76 = arith.addf %75, %22 : vector<2x32xf32>
    %77 = arith.mulf %65, %76 : vector<2x32xf32>
    %78 = arith.addf %74, %77 : vector<2x32xf32>
    %79 = math.tanh %78 : vector<2x32xf32>
    %80 = arith.subf %55, %79 : vector<2x32xf32>
    %81 = arith.mulf %73, %80 : vector<2x32xf32>
    %82 = arith.addf %79, %81 : vector<2x32xf32>
    %83 = vector.extract_strided_slice %27 {offsets = [4, 0], sizes = [2, 96], strides = [1, 1]} : vector<16x96xf32> to vector<2x96xf32>
    %cst_17 = arith.constant dense<0.000000e+00> : vector<2x96xf32>
    %84 = tpu.matmul %82, %19, %cst_17 {dimension_numbers = #tpu.dot_dimension_numbers<[1], [0], [0], [1], [0, 0, 1, 1], [], []>} : vector<2x32xf32>, vector<32x96xf32>, vector<2x96xf32> -> vector<2x96xf32>
    %85 = vector.extract_strided_slice %83 {offsets = [0, 0], sizes = [2, 32], strides = [1, 1]} : vector<2x96xf32> to vector<2x32xf32>
    %86 = vector.extract_strided_slice %84 {offsets = [0, 0], sizes = [2, 32], strides = [1, 1]} : vector<2x96xf32> to vector<2x32xf32>
    %87 = arith.addf %85, %86 : vector<2x32xf32>
    %88 = arith.negf %87 : vector<2x32xf32>
    %89 = math.exp %88 : vector<2x32xf32>
    %cst_18 = arith.constant 1.000000e+00 : f32
    %90 = vector.broadcast %cst_18 : f32 to vector<2x32xf32>
    %91 = arith.addf %90, %89 : vector<2x32xf32>
    %92 = arith.divf %90, %91 : vector<2x32xf32>
    %93 = vector.extract_strided_slice %83 {offsets = [0, 32], sizes = [2, 32], strides = [1, 1]} : vector<2x96xf32> to vector<2x32xf32>
    %94 = vector.extract_strided_slice %84 {offsets = [0, 32], sizes = [2, 32], strides = [1, 1]} : vector<2x96xf32> to vector<2x32xf32>
    %95 = arith.addf %93, %94 : vector<2x32xf32>
    %96 = arith.negf %95 : vector<2x32xf32>
    %97 = math.exp %96 : vector<2x32xf32>
    %cst_19 = arith.constant 1.000000e+00 : f32
    %98 = vector.broadcast %cst_19 : f32 to vector<2x32xf32>
    %99 = arith.addf %98, %97 : vector<2x32xf32>
    %100 = arith.divf %98, %99 : vector<2x32xf32>
    %101 = vector.extract_strided_slice %83 {offsets = [0, 64], sizes = [2, 32], strides = [1, 1]} : vector<2x96xf32> to vector<2x32xf32>
    %102 = vector.extract_strided_slice %84 {offsets = [0, 64], sizes = [2, 32], strides = [1, 1]} : vector<2x96xf32> to vector<2x32xf32>
    %103 = arith.addf %102, %22 : vector<2x32xf32>
    %104 = arith.mulf %92, %103 : vector<2x32xf32>
    %105 = arith.addf %101, %104 : vector<2x32xf32>
    %106 = math.tanh %105 : vector<2x32xf32>
    %107 = arith.subf %82, %106 : vector<2x32xf32>
    %108 = arith.mulf %100, %107 : vector<2x32xf32>
    %109 = arith.addf %106, %108 : vector<2x32xf32>
    %110 = vector.extract_strided_slice %27 {offsets = [6, 0], sizes = [2, 96], strides = [1, 1]} : vector<16x96xf32> to vector<2x96xf32>
    %cst_20 = arith.constant dense<0.000000e+00> : vector<2x96xf32>
    %111 = tpu.matmul %109, %19, %cst_20 {dimension_numbers = #tpu.dot_dimension_numbers<[1], [0], [0], [1], [0, 0, 1, 1], [], []>} : vector<2x32xf32>, vector<32x96xf32>, vector<2x96xf32> -> vector<2x96xf32>
    %112 = vector.extract_strided_slice %110 {offsets = [0, 0], sizes = [2, 32], strides = [1, 1]} : vector<2x96xf32> to vector<2x32xf32>
    %113 = vector.extract_strided_slice %111 {offsets = [0, 0], sizes = [2, 32], strides = [1, 1]} : vector<2x96xf32> to vector<2x32xf32>
    %114 = arith.addf %112, %113 : vector<2x32xf32>
    %115 = arith.negf %114 : vector<2x32xf32>
    %116 = math.exp %115 : vector<2x32xf32>
    %cst_21 = arith.constant 1.000000e+00 : f32
    %117 = vector.broadcast %cst_21 : f32 to vector<2x32xf32>
    %118 = arith.addf %117, %116 : vector<2x32xf32>
    %119 = arith.divf %117, %118 : vector<2x32xf32>
    %120 = vector.extract_strided_slice %110 {offsets = [0, 32], sizes = [2, 32], strides = [1, 1]} : vector<2x96xf32> to vector<2x32xf32>
    %121 = vector.extract_strided_slice %111 {offsets = [0, 32], sizes = [2, 32], strides = [1, 1]} : vector<2x96xf32> to vector<2x32xf32>
    %122 = arith.addf %120, %121 : vector<2x32xf32>
    %123 = arith.negf %122 : vector<2x32xf32>
    %124 = math.exp %123 : vector<2x32xf32>
    %cst_22 = arith.constant 1.000000e+00 : f32
    %125 = vector.broadcast %cst_22 : f32 to vector<2x32xf32>
    %126 = arith.addf %125, %124 : vector<2x32xf32>
    %127 = arith.divf %125, %126 : vector<2x32xf32>
    %128 = vector.extract_strided_slice %110 {offsets = [0, 64], sizes = [2, 32], strides = [1, 1]} : vector<2x96xf32> to vector<2x32xf32>
    %129 = vector.extract_strided_slice %111 {offsets = [0, 64], sizes = [2, 32], strides = [1, 1]} : vector<2x96xf32> to vector<2x32xf32>
    %130 = arith.addf %129, %22 : vector<2x32xf32>
    %131 = arith.mulf %119, %130 : vector<2x32xf32>
    %132 = arith.addf %128, %131 : vector<2x32xf32>
    %133 = math.tanh %132 : vector<2x32xf32>
    %134 = arith.subf %109, %133 : vector<2x32xf32>
    %135 = arith.mulf %127, %134 : vector<2x32xf32>
    %136 = arith.addf %133, %135 : vector<2x32xf32>
    %137 = vector.extract_strided_slice %27 {offsets = [8, 0], sizes = [2, 96], strides = [1, 1]} : vector<16x96xf32> to vector<2x96xf32>
    %cst_23 = arith.constant dense<0.000000e+00> : vector<2x96xf32>
    %138 = tpu.matmul %136, %19, %cst_23 {dimension_numbers = #tpu.dot_dimension_numbers<[1], [0], [0], [1], [0, 0, 1, 1], [], []>} : vector<2x32xf32>, vector<32x96xf32>, vector<2x96xf32> -> vector<2x96xf32>
    %139 = vector.extract_strided_slice %137 {offsets = [0, 0], sizes = [2, 32], strides = [1, 1]} : vector<2x96xf32> to vector<2x32xf32>
    %140 = vector.extract_strided_slice %138 {offsets = [0, 0], sizes = [2, 32], strides = [1, 1]} : vector<2x96xf32> to vector<2x32xf32>
    %141 = arith.addf %139, %140 : vector<2x32xf32>
    %142 = arith.negf %141 : vector<2x32xf32>
    %143 = math.exp %142 : vector<2x32xf32>
    %cst_24 = arith.constant 1.000000e+00 : f32
    %144 = vector.broadcast %cst_24 : f32 to vector<2x32xf32>
    %145 = arith.addf %144, %143 : vector<2x32xf32>
    %146 = arith.divf %144, %145 : vector<2x32xf32>
    %147 = vector.extract_strided_slice %137 {offsets = [0, 32], sizes = [2, 32], strides = [1, 1]} : vector<2x96xf32> to vector<2x32xf32>
    %148 = vector.extract_strided_slice %138 {offsets = [0, 32], sizes = [2, 32], strides = [1, 1]} : vector<2x96xf32> to vector<2x32xf32>
    %149 = arith.addf %147, %148 : vector<2x32xf32>
    %150 = arith.negf %149 : vector<2x32xf32>
    %151 = math.exp %150 : vector<2x32xf32>
    %cst_25 = arith.constant 1.000000e+00 : f32
    %152 = vector.broadcast %cst_25 : f32 to vector<2x32xf32>
    %153 = arith.addf %152, %151 : vector<2x32xf32>
    %154 = arith.divf %152, %153 : vector<2x32xf32>
    %155 = vector.extract_strided_slice %137 {offsets = [0, 64], sizes = [2, 32], strides = [1, 1]} : vector<2x96xf32> to vector<2x32xf32>
    %156 = vector.extract_strided_slice %138 {offsets = [0, 64], sizes = [2, 32], strides = [1, 1]} : vector<2x96xf32> to vector<2x32xf32>
    %157 = arith.addf %156, %22 : vector<2x32xf32>
    %158 = arith.mulf %146, %157 : vector<2x32xf32>
    %159 = arith.addf %155, %158 : vector<2x32xf32>
    %160 = math.tanh %159 : vector<2x32xf32>
    %161 = arith.subf %136, %160 : vector<2x32xf32>
    %162 = arith.mulf %154, %161 : vector<2x32xf32>
    %163 = arith.addf %160, %162 : vector<2x32xf32>
    %164 = vector.extract_strided_slice %27 {offsets = [10, 0], sizes = [2, 96], strides = [1, 1]} : vector<16x96xf32> to vector<2x96xf32>
    %cst_26 = arith.constant dense<0.000000e+00> : vector<2x96xf32>
    %165 = tpu.matmul %163, %19, %cst_26 {dimension_numbers = #tpu.dot_dimension_numbers<[1], [0], [0], [1], [0, 0, 1, 1], [], []>} : vector<2x32xf32>, vector<32x96xf32>, vector<2x96xf32> -> vector<2x96xf32>
    %166 = vector.extract_strided_slice %164 {offsets = [0, 0], sizes = [2, 32], strides = [1, 1]} : vector<2x96xf32> to vector<2x32xf32>
    %167 = vector.extract_strided_slice %165 {offsets = [0, 0], sizes = [2, 32], strides = [1, 1]} : vector<2x96xf32> to vector<2x32xf32>
    %168 = arith.addf %166, %167 : vector<2x32xf32>
    %169 = arith.negf %168 : vector<2x32xf32>
    %170 = math.exp %169 : vector<2x32xf32>
    %cst_27 = arith.constant 1.000000e+00 : f32
    %171 = vector.broadcast %cst_27 : f32 to vector<2x32xf32>
    %172 = arith.addf %171, %170 : vector<2x32xf32>
    %173 = arith.divf %171, %172 : vector<2x32xf32>
    %174 = vector.extract_strided_slice %164 {offsets = [0, 32], sizes = [2, 32], strides = [1, 1]} : vector<2x96xf32> to vector<2x32xf32>
    %175 = vector.extract_strided_slice %165 {offsets = [0, 32], sizes = [2, 32], strides = [1, 1]} : vector<2x96xf32> to vector<2x32xf32>
    %176 = arith.addf %174, %175 : vector<2x32xf32>
    %177 = arith.negf %176 : vector<2x32xf32>
    %178 = math.exp %177 : vector<2x32xf32>
    %cst_28 = arith.constant 1.000000e+00 : f32
    %179 = vector.broadcast %cst_28 : f32 to vector<2x32xf32>
    %180 = arith.addf %179, %178 : vector<2x32xf32>
    %181 = arith.divf %179, %180 : vector<2x32xf32>
    %182 = vector.extract_strided_slice %164 {offsets = [0, 64], sizes = [2, 32], strides = [1, 1]} : vector<2x96xf32> to vector<2x32xf32>
    %183 = vector.extract_strided_slice %165 {offsets = [0, 64], sizes = [2, 32], strides = [1, 1]} : vector<2x96xf32> to vector<2x32xf32>
    %184 = arith.addf %183, %22 : vector<2x32xf32>
    %185 = arith.mulf %173, %184 : vector<2x32xf32>
    %186 = arith.addf %182, %185 : vector<2x32xf32>
    %187 = math.tanh %186 : vector<2x32xf32>
    %188 = arith.subf %163, %187 : vector<2x32xf32>
    %189 = arith.mulf %181, %188 : vector<2x32xf32>
    %190 = arith.addf %187, %189 : vector<2x32xf32>
    %191 = vector.extract_strided_slice %27 {offsets = [12, 0], sizes = [2, 96], strides = [1, 1]} : vector<16x96xf32> to vector<2x96xf32>
    %cst_29 = arith.constant dense<0.000000e+00> : vector<2x96xf32>
    %192 = tpu.matmul %190, %19, %cst_29 {dimension_numbers = #tpu.dot_dimension_numbers<[1], [0], [0], [1], [0, 0, 1, 1], [], []>} : vector<2x32xf32>, vector<32x96xf32>, vector<2x96xf32> -> vector<2x96xf32>
    %193 = vector.extract_strided_slice %191 {offsets = [0, 0], sizes = [2, 32], strides = [1, 1]} : vector<2x96xf32> to vector<2x32xf32>
    %194 = vector.extract_strided_slice %192 {offsets = [0, 0], sizes = [2, 32], strides = [1, 1]} : vector<2x96xf32> to vector<2x32xf32>
    %195 = arith.addf %193, %194 : vector<2x32xf32>
    %196 = arith.negf %195 : vector<2x32xf32>
    %197 = math.exp %196 : vector<2x32xf32>
    %cst_30 = arith.constant 1.000000e+00 : f32
    %198 = vector.broadcast %cst_30 : f32 to vector<2x32xf32>
    %199 = arith.addf %198, %197 : vector<2x32xf32>
    %200 = arith.divf %198, %199 : vector<2x32xf32>
    %201 = vector.extract_strided_slice %191 {offsets = [0, 32], sizes = [2, 32], strides = [1, 1]} : vector<2x96xf32> to vector<2x32xf32>
    %202 = vector.extract_strided_slice %192 {offsets = [0, 32], sizes = [2, 32], strides = [1, 1]} : vector<2x96xf32> to vector<2x32xf32>
    %203 = arith.addf %201, %202 : vector<2x32xf32>
    %204 = arith.negf %203 : vector<2x32xf32>
    %205 = math.exp %204 : vector<2x32xf32>
    %cst_31 = arith.constant 1.000000e+00 : f32
    %206 = vector.broadcast %cst_31 : f32 to vector<2x32xf32>
    %207 = arith.addf %206, %205 : vector<2x32xf32>
    %208 = arith.divf %206, %207 : vector<2x32xf32>
    %209 = vector.extract_strided_slice %191 {offsets = [0, 64], sizes = [2, 32], strides = [1, 1]} : vector<2x96xf32> to vector<2x32xf32>
    %210 = vector.extract_strided_slice %192 {offsets = [0, 64], sizes = [2, 32], strides = [1, 1]} : vector<2x96xf32> to vector<2x32xf32>
    %211 = arith.addf %210, %22 : vector<2x32xf32>
    %212 = arith.mulf %200, %211 : vector<2x32xf32>
    %213 = arith.addf %209, %212 : vector<2x32xf32>
    %214 = math.tanh %213 : vector<2x32xf32>
    %215 = arith.subf %190, %214 : vector<2x32xf32>
    %216 = arith.mulf %208, %215 : vector<2x32xf32>
    %217 = arith.addf %214, %216 : vector<2x32xf32>
    %218 = vector.extract_strided_slice %27 {offsets = [14, 0], sizes = [2, 96], strides = [1, 1]} : vector<16x96xf32> to vector<2x96xf32>
    %cst_32 = arith.constant dense<0.000000e+00> : vector<2x96xf32>
    %219 = tpu.matmul %217, %19, %cst_32 {dimension_numbers = #tpu.dot_dimension_numbers<[1], [0], [0], [1], [0, 0, 1, 1], [], []>} : vector<2x32xf32>, vector<32x96xf32>, vector<2x96xf32> -> vector<2x96xf32>
    %220 = vector.extract_strided_slice %218 {offsets = [0, 0], sizes = [2, 32], strides = [1, 1]} : vector<2x96xf32> to vector<2x32xf32>
    %221 = vector.extract_strided_slice %219 {offsets = [0, 0], sizes = [2, 32], strides = [1, 1]} : vector<2x96xf32> to vector<2x32xf32>
    %222 = arith.addf %220, %221 : vector<2x32xf32>
    %223 = arith.negf %222 : vector<2x32xf32>
    %224 = math.exp %223 : vector<2x32xf32>
    %cst_33 = arith.constant 1.000000e+00 : f32
    %225 = vector.broadcast %cst_33 : f32 to vector<2x32xf32>
    %226 = arith.addf %225, %224 : vector<2x32xf32>
    %227 = arith.divf %225, %226 : vector<2x32xf32>
    %228 = vector.extract_strided_slice %218 {offsets = [0, 32], sizes = [2, 32], strides = [1, 1]} : vector<2x96xf32> to vector<2x32xf32>
    %229 = vector.extract_strided_slice %219 {offsets = [0, 32], sizes = [2, 32], strides = [1, 1]} : vector<2x96xf32> to vector<2x32xf32>
    %230 = arith.addf %228, %229 : vector<2x32xf32>
    %231 = arith.negf %230 : vector<2x32xf32>
    %232 = math.exp %231 : vector<2x32xf32>
    %cst_34 = arith.constant 1.000000e+00 : f32
    %233 = vector.broadcast %cst_34 : f32 to vector<2x32xf32>
    %234 = arith.addf %233, %232 : vector<2x32xf32>
    %235 = arith.divf %233, %234 : vector<2x32xf32>
    %236 = vector.extract_strided_slice %218 {offsets = [0, 64], sizes = [2, 32], strides = [1, 1]} : vector<2x96xf32> to vector<2x32xf32>
    %237 = vector.extract_strided_slice %219 {offsets = [0, 64], sizes = [2, 32], strides = [1, 1]} : vector<2x96xf32> to vector<2x32xf32>
    %238 = arith.addf %237, %22 : vector<2x32xf32>
    %239 = arith.mulf %227, %238 : vector<2x32xf32>
    %240 = arith.addf %236, %239 : vector<2x32xf32>
    %241 = math.tanh %240 : vector<2x32xf32>
    %242 = arith.subf %217, %241 : vector<2x32xf32>
    %243 = arith.mulf %235, %242 : vector<2x32xf32>
    %244 = arith.addf %241, %243 : vector<2x32xf32>
    %245 = tpu.concatenate %55, %82, %109, %136, %163, %190, %217, %244 in 0 : vector<2x32xf32>, vector<2x32xf32>, vector<2x32xf32>, vector<2x32xf32>, vector<2x32xf32>, vector<2x32xf32>, vector<2x32xf32>, vector<2x32xf32> -> vector<16x32xf32>
    %c0_35 = arith.constant 0 : index
    %c0_36 = arith.constant 0 : index
    %246 = vector.load %arg6[%c0_35, %c0_36] : memref<32x96xf32, #tpu.memory_space<vmem>>, vector<32x96xf32>
    %c0_37 = arith.constant 0 : index
    %c0_38 = arith.constant 0 : index
    %247 = vector.load %arg8[%c0_37, %c0_38] : memref<1x32xf32, #tpu.memory_space<vmem>>, vector<1x32xf32>
    %248 = vector.shape_cast %247 : vector<1x32xf32> to vector<1x32xf32>
    %249 = vector.broadcast %248 : vector<1x32xf32> to vector<2x32xf32>
    %c0_39 = arith.constant 0 : index
    %c0_40 = arith.constant 0 : index
    %250 = vector.load %arg5[%c0_39, %c0_40] : memref<32x96xf32, #tpu.memory_space<vmem>>, vector<32x96xf32>
    %cst_41 = arith.constant dense<0.000000e+00> : vector<16x96xf32>
    %251 = tpu.matmul %245, %250, %cst_41 {dimension_numbers = #tpu.dot_dimension_numbers<[1], [0], [0], [1], [0, 0, 1, 1], [], []>} : vector<16x32xf32>, vector<32x96xf32>, vector<16x96xf32> -> vector<16x96xf32>
    %c0_42 = arith.constant 0 : index
    %c0_43 = arith.constant 0 : index
    %252 = vector.load %arg7[%c0_42, %c0_43] : memref<1x96xf32, #tpu.memory_space<vmem>>, vector<1x96xf32>
    %253 = vector.broadcast %252 : vector<1x96xf32> to vector<16x96xf32>
    %254 = arith.addf %251, %253 : vector<16x96xf32>
    %cst_44 = arith.constant 0.000000e+00 : f32
    %255 = vector.broadcast %cst_44 : f32 to vector<2x32xf32>
    %256 = vector.extract_strided_slice %254 {offsets = [0, 0], sizes = [2, 96], strides = [1, 1]} : vector<16x96xf32> to vector<2x96xf32>
    %cst_45 = arith.constant dense<0.000000e+00> : vector<2x96xf32>
    %257 = tpu.matmul %255, %246, %cst_45 {dimension_numbers = #tpu.dot_dimension_numbers<[1], [0], [0], [1], [0, 0, 1, 1], [], []>} : vector<2x32xf32>, vector<32x96xf32>, vector<2x96xf32> -> vector<2x96xf32>
    %258 = vector.extract_strided_slice %256 {offsets = [0, 0], sizes = [2, 32], strides = [1, 1]} : vector<2x96xf32> to vector<2x32xf32>
    %259 = vector.extract_strided_slice %257 {offsets = [0, 0], sizes = [2, 32], strides = [1, 1]} : vector<2x96xf32> to vector<2x32xf32>
    %260 = arith.addf %258, %259 : vector<2x32xf32>
    %261 = arith.negf %260 : vector<2x32xf32>
    %262 = math.exp %261 : vector<2x32xf32>
    %cst_46 = arith.constant 1.000000e+00 : f32
    %263 = vector.broadcast %cst_46 : f32 to vector<2x32xf32>
    %264 = arith.addf %263, %262 : vector<2x32xf32>
    %265 = arith.divf %263, %264 : vector<2x32xf32>
    %266 = vector.extract_strided_slice %256 {offsets = [0, 32], sizes = [2, 32], strides = [1, 1]} : vector<2x96xf32> to vector<2x32xf32>
    %267 = vector.extract_strided_slice %257 {offsets = [0, 32], sizes = [2, 32], strides = [1, 1]} : vector<2x96xf32> to vector<2x32xf32>
    %268 = arith.addf %266, %267 : vector<2x32xf32>
    %269 = arith.negf %268 : vector<2x32xf32>
    %270 = math.exp %269 : vector<2x32xf32>
    %cst_47 = arith.constant 1.000000e+00 : f32
    %271 = vector.broadcast %cst_47 : f32 to vector<2x32xf32>
    %272 = arith.addf %271, %270 : vector<2x32xf32>
    %273 = arith.divf %271, %272 : vector<2x32xf32>
    %274 = vector.extract_strided_slice %256 {offsets = [0, 64], sizes = [2, 32], strides = [1, 1]} : vector<2x96xf32> to vector<2x32xf32>
    %275 = vector.extract_strided_slice %257 {offsets = [0, 64], sizes = [2, 32], strides = [1, 1]} : vector<2x96xf32> to vector<2x32xf32>
    %276 = arith.addf %275, %249 : vector<2x32xf32>
    %277 = arith.mulf %265, %276 : vector<2x32xf32>
    %278 = arith.addf %274, %277 : vector<2x32xf32>
    %279 = math.tanh %278 : vector<2x32xf32>
    %280 = arith.subf %255, %279 : vector<2x32xf32>
    %281 = arith.mulf %273, %280 : vector<2x32xf32>
    %282 = arith.addf %279, %281 : vector<2x32xf32>
    %283 = vector.extract_strided_slice %254 {offsets = [2, 0], sizes = [2, 96], strides = [1, 1]} : vector<16x96xf32> to vector<2x96xf32>
    %cst_48 = arith.constant dense<0.000000e+00> : vector<2x96xf32>
    %284 = tpu.matmul %282, %246, %cst_48 {dimension_numbers = #tpu.dot_dimension_numbers<[1], [0], [0], [1], [0, 0, 1, 1], [], []>} : vector<2x32xf32>, vector<32x96xf32>, vector<2x96xf32> -> vector<2x96xf32>
    %285 = vector.extract_strided_slice %283 {offsets = [0, 0], sizes = [2, 32], strides = [1, 1]} : vector<2x96xf32> to vector<2x32xf32>
    %286 = vector.extract_strided_slice %284 {offsets = [0, 0], sizes = [2, 32], strides = [1, 1]} : vector<2x96xf32> to vector<2x32xf32>
    %287 = arith.addf %285, %286 : vector<2x32xf32>
    %288 = arith.negf %287 : vector<2x32xf32>
    %289 = math.exp %288 : vector<2x32xf32>
    %cst_49 = arith.constant 1.000000e+00 : f32
    %290 = vector.broadcast %cst_49 : f32 to vector<2x32xf32>
    %291 = arith.addf %290, %289 : vector<2x32xf32>
    %292 = arith.divf %290, %291 : vector<2x32xf32>
    %293 = vector.extract_strided_slice %283 {offsets = [0, 32], sizes = [2, 32], strides = [1, 1]} : vector<2x96xf32> to vector<2x32xf32>
    %294 = vector.extract_strided_slice %284 {offsets = [0, 32], sizes = [2, 32], strides = [1, 1]} : vector<2x96xf32> to vector<2x32xf32>
    %295 = arith.addf %293, %294 : vector<2x32xf32>
    %296 = arith.negf %295 : vector<2x32xf32>
    %297 = math.exp %296 : vector<2x32xf32>
    %cst_50 = arith.constant 1.000000e+00 : f32
    %298 = vector.broadcast %cst_50 : f32 to vector<2x32xf32>
    %299 = arith.addf %298, %297 : vector<2x32xf32>
    %300 = arith.divf %298, %299 : vector<2x32xf32>
    %301 = vector.extract_strided_slice %283 {offsets = [0, 64], sizes = [2, 32], strides = [1, 1]} : vector<2x96xf32> to vector<2x32xf32>
    %302 = vector.extract_strided_slice %284 {offsets = [0, 64], sizes = [2, 32], strides = [1, 1]} : vector<2x96xf32> to vector<2x32xf32>
    %303 = arith.addf %302, %249 : vector<2x32xf32>
    %304 = arith.mulf %292, %303 : vector<2x32xf32>
    %305 = arith.addf %301, %304 : vector<2x32xf32>
    %306 = math.tanh %305 : vector<2x32xf32>
    %307 = arith.subf %282, %306 : vector<2x32xf32>
    %308 = arith.mulf %300, %307 : vector<2x32xf32>
    %309 = arith.addf %306, %308 : vector<2x32xf32>
    %310 = vector.extract_strided_slice %254 {offsets = [4, 0], sizes = [2, 96], strides = [1, 1]} : vector<16x96xf32> to vector<2x96xf32>
    %cst_51 = arith.constant dense<0.000000e+00> : vector<2x96xf32>
    %311 = tpu.matmul %309, %246, %cst_51 {dimension_numbers = #tpu.dot_dimension_numbers<[1], [0], [0], [1], [0, 0, 1, 1], [], []>} : vector<2x32xf32>, vector<32x96xf32>, vector<2x96xf32> -> vector<2x96xf32>
    %312 = vector.extract_strided_slice %310 {offsets = [0, 0], sizes = [2, 32], strides = [1, 1]} : vector<2x96xf32> to vector<2x32xf32>
    %313 = vector.extract_strided_slice %311 {offsets = [0, 0], sizes = [2, 32], strides = [1, 1]} : vector<2x96xf32> to vector<2x32xf32>
    %314 = arith.addf %312, %313 : vector<2x32xf32>
    %315 = arith.negf %314 : vector<2x32xf32>
    %316 = math.exp %315 : vector<2x32xf32>
    %cst_52 = arith.constant 1.000000e+00 : f32
    %317 = vector.broadcast %cst_52 : f32 to vector<2x32xf32>
    %318 = arith.addf %317, %316 : vector<2x32xf32>
    %319 = arith.divf %317, %318 : vector<2x32xf32>
    %320 = vector.extract_strided_slice %310 {offsets = [0, 32], sizes = [2, 32], strides = [1, 1]} : vector<2x96xf32> to vector<2x32xf32>
    %321 = vector.extract_strided_slice %311 {offsets = [0, 32], sizes = [2, 32], strides = [1, 1]} : vector<2x96xf32> to vector<2x32xf32>
    %322 = arith.addf %320, %321 : vector<2x32xf32>
    %323 = arith.negf %322 : vector<2x32xf32>
    %324 = math.exp %323 : vector<2x32xf32>
    %cst_53 = arith.constant 1.000000e+00 : f32
    %325 = vector.broadcast %cst_53 : f32 to vector<2x32xf32>
    %326 = arith.addf %325, %324 : vector<2x32xf32>
    %327 = arith.divf %325, %326 : vector<2x32xf32>
    %328 = vector.extract_strided_slice %310 {offsets = [0, 64], sizes = [2, 32], strides = [1, 1]} : vector<2x96xf32> to vector<2x32xf32>
    %329 = vector.extract_strided_slice %311 {offsets = [0, 64], sizes = [2, 32], strides = [1, 1]} : vector<2x96xf32> to vector<2x32xf32>
    %330 = arith.addf %329, %249 : vector<2x32xf32>
    %331 = arith.mulf %319, %330 : vector<2x32xf32>
    %332 = arith.addf %328, %331 : vector<2x32xf32>
    %333 = math.tanh %332 : vector<2x32xf32>
    %334 = arith.subf %309, %333 : vector<2x32xf32>
    %335 = arith.mulf %327, %334 : vector<2x32xf32>
    %336 = arith.addf %333, %335 : vector<2x32xf32>
    %337 = vector.extract_strided_slice %254 {offsets = [6, 0], sizes = [2, 96], strides = [1, 1]} : vector<16x96xf32> to vector<2x96xf32>
    %cst_54 = arith.constant dense<0.000000e+00> : vector<2x96xf32>
    %338 = tpu.matmul %336, %246, %cst_54 {dimension_numbers = #tpu.dot_dimension_numbers<[1], [0], [0], [1], [0, 0, 1, 1], [], []>} : vector<2x32xf32>, vector<32x96xf32>, vector<2x96xf32> -> vector<2x96xf32>
    %339 = vector.extract_strided_slice %337 {offsets = [0, 0], sizes = [2, 32], strides = [1, 1]} : vector<2x96xf32> to vector<2x32xf32>
    %340 = vector.extract_strided_slice %338 {offsets = [0, 0], sizes = [2, 32], strides = [1, 1]} : vector<2x96xf32> to vector<2x32xf32>
    %341 = arith.addf %339, %340 : vector<2x32xf32>
    %342 = arith.negf %341 : vector<2x32xf32>
    %343 = math.exp %342 : vector<2x32xf32>
    %cst_55 = arith.constant 1.000000e+00 : f32
    %344 = vector.broadcast %cst_55 : f32 to vector<2x32xf32>
    %345 = arith.addf %344, %343 : vector<2x32xf32>
    %346 = arith.divf %344, %345 : vector<2x32xf32>
    %347 = vector.extract_strided_slice %337 {offsets = [0, 32], sizes = [2, 32], strides = [1, 1]} : vector<2x96xf32> to vector<2x32xf32>
    %348 = vector.extract_strided_slice %338 {offsets = [0, 32], sizes = [2, 32], strides = [1, 1]} : vector<2x96xf32> to vector<2x32xf32>
    %349 = arith.addf %347, %348 : vector<2x32xf32>
    %350 = arith.negf %349 : vector<2x32xf32>
    %351 = math.exp %350 : vector<2x32xf32>
    %cst_56 = arith.constant 1.000000e+00 : f32
    %352 = vector.broadcast %cst_56 : f32 to vector<2x32xf32>
    %353 = arith.addf %352, %351 : vector<2x32xf32>
    %354 = arith.divf %352, %353 : vector<2x32xf32>
    %355 = vector.extract_strided_slice %337 {offsets = [0, 64], sizes = [2, 32], strides = [1, 1]} : vector<2x96xf32> to vector<2x32xf32>
    %356 = vector.extract_strided_slice %338 {offsets = [0, 64], sizes = [2, 32], strides = [1, 1]} : vector<2x96xf32> to vector<2x32xf32>
    %357 = arith.addf %356, %249 : vector<2x32xf32>
    %358 = arith.mulf %346, %357 : vector<2x32xf32>
    %359 = arith.addf %355, %358 : vector<2x32xf32>
    %360 = math.tanh %359 : vector<2x32xf32>
    %361 = arith.subf %336, %360 : vector<2x32xf32>
    %362 = arith.mulf %354, %361 : vector<2x32xf32>
    %363 = arith.addf %360, %362 : vector<2x32xf32>
    %364 = vector.extract_strided_slice %254 {offsets = [8, 0], sizes = [2, 96], strides = [1, 1]} : vector<16x96xf32> to vector<2x96xf32>
    %cst_57 = arith.constant dense<0.000000e+00> : vector<2x96xf32>
    %365 = tpu.matmul %363, %246, %cst_57 {dimension_numbers = #tpu.dot_dimension_numbers<[1], [0], [0], [1], [0, 0, 1, 1], [], []>} : vector<2x32xf32>, vector<32x96xf32>, vector<2x96xf32> -> vector<2x96xf32>
    %366 = vector.extract_strided_slice %364 {offsets = [0, 0], sizes = [2, 32], strides = [1, 1]} : vector<2x96xf32> to vector<2x32xf32>
    %367 = vector.extract_strided_slice %365 {offsets = [0, 0], sizes = [2, 32], strides = [1, 1]} : vector<2x96xf32> to vector<2x32xf32>
    %368 = arith.addf %366, %367 : vector<2x32xf32>
    %369 = arith.negf %368 : vector<2x32xf32>
    %370 = math.exp %369 : vector<2x32xf32>
    %cst_58 = arith.constant 1.000000e+00 : f32
    %371 = vector.broadcast %cst_58 : f32 to vector<2x32xf32>
    %372 = arith.addf %371, %370 : vector<2x32xf32>
    %373 = arith.divf %371, %372 : vector<2x32xf32>
    %374 = vector.extract_strided_slice %364 {offsets = [0, 32], sizes = [2, 32], strides = [1, 1]} : vector<2x96xf32> to vector<2x32xf32>
    %375 = vector.extract_strided_slice %365 {offsets = [0, 32], sizes = [2, 32], strides = [1, 1]} : vector<2x96xf32> to vector<2x32xf32>
    %376 = arith.addf %374, %375 : vector<2x32xf32>
    %377 = arith.negf %376 : vector<2x32xf32>
    %378 = math.exp %377 : vector<2x32xf32>
    %cst_59 = arith.constant 1.000000e+00 : f32
    %379 = vector.broadcast %cst_59 : f32 to vector<2x32xf32>
    %380 = arith.addf %379, %378 : vector<2x32xf32>
    %381 = arith.divf %379, %380 : vector<2x32xf32>
    %382 = vector.extract_strided_slice %364 {offsets = [0, 64], sizes = [2, 32], strides = [1, 1]} : vector<2x96xf32> to vector<2x32xf32>
    %383 = vector.extract_strided_slice %365 {offsets = [0, 64], sizes = [2, 32], strides = [1, 1]} : vector<2x96xf32> to vector<2x32xf32>
    %384 = arith.addf %383, %249 : vector<2x32xf32>
    %385 = arith.mulf %373, %384 : vector<2x32xf32>
    %386 = arith.addf %382, %385 : vector<2x32xf32>
    %387 = math.tanh %386 : vector<2x32xf32>
    %388 = arith.subf %363, %387 : vector<2x32xf32>
    %389 = arith.mulf %381, %388 : vector<2x32xf32>
    %390 = arith.addf %387, %389 : vector<2x32xf32>
    %391 = vector.extract_strided_slice %254 {offsets = [10, 0], sizes = [2, 96], strides = [1, 1]} : vector<16x96xf32> to vector<2x96xf32>
    %cst_60 = arith.constant dense<0.000000e+00> : vector<2x96xf32>
    %392 = tpu.matmul %390, %246, %cst_60 {dimension_numbers = #tpu.dot_dimension_numbers<[1], [0], [0], [1], [0, 0, 1, 1], [], []>} : vector<2x32xf32>, vector<32x96xf32>, vector<2x96xf32> -> vector<2x96xf32>
    %393 = vector.extract_strided_slice %391 {offsets = [0, 0], sizes = [2, 32], strides = [1, 1]} : vector<2x96xf32> to vector<2x32xf32>
    %394 = vector.extract_strided_slice %392 {offsets = [0, 0], sizes = [2, 32], strides = [1, 1]} : vector<2x96xf32> to vector<2x32xf32>
    %395 = arith.addf %393, %394 : vector<2x32xf32>
    %396 = arith.negf %395 : vector<2x32xf32>
    %397 = math.exp %396 : vector<2x32xf32>
    %cst_61 = arith.constant 1.000000e+00 : f32
    %398 = vector.broadcast %cst_61 : f32 to vector<2x32xf32>
    %399 = arith.addf %398, %397 : vector<2x32xf32>
    %400 = arith.divf %398, %399 : vector<2x32xf32>
    %401 = vector.extract_strided_slice %391 {offsets = [0, 32], sizes = [2, 32], strides = [1, 1]} : vector<2x96xf32> to vector<2x32xf32>
    %402 = vector.extract_strided_slice %392 {offsets = [0, 32], sizes = [2, 32], strides = [1, 1]} : vector<2x96xf32> to vector<2x32xf32>
    %403 = arith.addf %401, %402 : vector<2x32xf32>
    %404 = arith.negf %403 : vector<2x32xf32>
    %405 = math.exp %404 : vector<2x32xf32>
    %cst_62 = arith.constant 1.000000e+00 : f32
    %406 = vector.broadcast %cst_62 : f32 to vector<2x32xf32>
    %407 = arith.addf %406, %405 : vector<2x32xf32>
    %408 = arith.divf %406, %407 : vector<2x32xf32>
    %409 = vector.extract_strided_slice %391 {offsets = [0, 64], sizes = [2, 32], strides = [1, 1]} : vector<2x96xf32> to vector<2x32xf32>
    %410 = vector.extract_strided_slice %392 {offsets = [0, 64], sizes = [2, 32], strides = [1, 1]} : vector<2x96xf32> to vector<2x32xf32>
    %411 = arith.addf %410, %249 : vector<2x32xf32>
    %412 = arith.mulf %400, %411 : vector<2x32xf32>
    %413 = arith.addf %409, %412 : vector<2x32xf32>
    %414 = math.tanh %413 : vector<2x32xf32>
    %415 = arith.subf %390, %414 : vector<2x32xf32>
    %416 = arith.mulf %408, %415 : vector<2x32xf32>
    %417 = arith.addf %414, %416 : vector<2x32xf32>
    %418 = vector.extract_strided_slice %254 {offsets = [12, 0], sizes = [2, 96], strides = [1, 1]} : vector<16x96xf32> to vector<2x96xf32>
    %cst_63 = arith.constant dense<0.000000e+00> : vector<2x96xf32>
    %419 = tpu.matmul %417, %246, %cst_63 {dimension_numbers = #tpu.dot_dimension_numbers<[1], [0], [0], [1], [0, 0, 1, 1], [], []>} : vector<2x32xf32>, vector<32x96xf32>, vector<2x96xf32> -> vector<2x96xf32>
    %420 = vector.extract_strided_slice %418 {offsets = [0, 0], sizes = [2, 32], strides = [1, 1]} : vector<2x96xf32> to vector<2x32xf32>
    %421 = vector.extract_strided_slice %419 {offsets = [0, 0], sizes = [2, 32], strides = [1, 1]} : vector<2x96xf32> to vector<2x32xf32>
    %422 = arith.addf %420, %421 : vector<2x32xf32>
    %423 = arith.negf %422 : vector<2x32xf32>
    %424 = math.exp %423 : vector<2x32xf32>
    %cst_64 = arith.constant 1.000000e+00 : f32
    %425 = vector.broadcast %cst_64 : f32 to vector<2x32xf32>
    %426 = arith.addf %425, %424 : vector<2x32xf32>
    %427 = arith.divf %425, %426 : vector<2x32xf32>
    %428 = vector.extract_strided_slice %418 {offsets = [0, 32], sizes = [2, 32], strides = [1, 1]} : vector<2x96xf32> to vector<2x32xf32>
    %429 = vector.extract_strided_slice %419 {offsets = [0, 32], sizes = [2, 32], strides = [1, 1]} : vector<2x96xf32> to vector<2x32xf32>
    %430 = arith.addf %428, %429 : vector<2x32xf32>
    %431 = arith.negf %430 : vector<2x32xf32>
    %432 = math.exp %431 : vector<2x32xf32>
    %cst_65 = arith.constant 1.000000e+00 : f32
    %433 = vector.broadcast %cst_65 : f32 to vector<2x32xf32>
    %434 = arith.addf %433, %432 : vector<2x32xf32>
    %435 = arith.divf %433, %434 : vector<2x32xf32>
    %436 = vector.extract_strided_slice %418 {offsets = [0, 64], sizes = [2, 32], strides = [1, 1]} : vector<2x96xf32> to vector<2x32xf32>
    %437 = vector.extract_strided_slice %419 {offsets = [0, 64], sizes = [2, 32], strides = [1, 1]} : vector<2x96xf32> to vector<2x32xf32>
    %438 = arith.addf %437, %249 : vector<2x32xf32>
    %439 = arith.mulf %427, %438 : vector<2x32xf32>
    %440 = arith.addf %436, %439 : vector<2x32xf32>
    %441 = math.tanh %440 : vector<2x32xf32>
    %442 = arith.subf %417, %441 : vector<2x32xf32>
    %443 = arith.mulf %435, %442 : vector<2x32xf32>
    %444 = arith.addf %441, %443 : vector<2x32xf32>
    %445 = vector.extract_strided_slice %254 {offsets = [14, 0], sizes = [2, 96], strides = [1, 1]} : vector<16x96xf32> to vector<2x96xf32>
    %cst_66 = arith.constant dense<0.000000e+00> : vector<2x96xf32>
    %446 = tpu.matmul %444, %246, %cst_66 {dimension_numbers = #tpu.dot_dimension_numbers<[1], [0], [0], [1], [0, 0, 1, 1], [], []>} : vector<2x32xf32>, vector<32x96xf32>, vector<2x96xf32> -> vector<2x96xf32>
    %447 = vector.extract_strided_slice %445 {offsets = [0, 0], sizes = [2, 32], strides = [1, 1]} : vector<2x96xf32> to vector<2x32xf32>
    %448 = vector.extract_strided_slice %446 {offsets = [0, 0], sizes = [2, 32], strides = [1, 1]} : vector<2x96xf32> to vector<2x32xf32>
    %449 = arith.addf %447, %448 : vector<2x32xf32>
    %450 = arith.negf %449 : vector<2x32xf32>
    %451 = math.exp %450 : vector<2x32xf32>
    %cst_67 = arith.constant 1.000000e+00 : f32
    %452 = vector.broadcast %cst_67 : f32 to vector<2x32xf32>
    %453 = arith.addf %452, %451 : vector<2x32xf32>
    %454 = arith.divf %452, %453 : vector<2x32xf32>
    %455 = vector.extract_strided_slice %445 {offsets = [0, 32], sizes = [2, 32], strides = [1, 1]} : vector<2x96xf32> to vector<2x32xf32>
    %456 = vector.extract_strided_slice %446 {offsets = [0, 32], sizes = [2, 32], strides = [1, 1]} : vector<2x96xf32> to vector<2x32xf32>
    %457 = arith.addf %455, %456 : vector<2x32xf32>
    %458 = arith.negf %457 : vector<2x32xf32>
    %459 = math.exp %458 : vector<2x32xf32>
    %cst_68 = arith.constant 1.000000e+00 : f32
    %460 = vector.broadcast %cst_68 : f32 to vector<2x32xf32>
    %461 = arith.addf %460, %459 : vector<2x32xf32>
    %462 = arith.divf %460, %461 : vector<2x32xf32>
    %463 = vector.extract_strided_slice %445 {offsets = [0, 64], sizes = [2, 32], strides = [1, 1]} : vector<2x96xf32> to vector<2x32xf32>
    %464 = vector.extract_strided_slice %446 {offsets = [0, 64], sizes = [2, 32], strides = [1, 1]} : vector<2x96xf32> to vector<2x32xf32>
    %465 = arith.addf %464, %249 : vector<2x32xf32>
    %466 = arith.mulf %454, %465 : vector<2x32xf32>
    %467 = arith.addf %463, %466 : vector<2x32xf32>
    %468 = math.tanh %467 : vector<2x32xf32>
    %469 = arith.subf %444, %468 : vector<2x32xf32>
    %470 = arith.mulf %462, %469 : vector<2x32xf32>
    %471 = arith.addf %468, %470 : vector<2x32xf32>
    %c0_69 = arith.constant 0 : index
    %c0_70 = arith.constant 0 : index
    %472 = vector.load %arg9[%c0_69, %c0_70] : memref<32x4xf32, #tpu.memory_space<vmem>>, vector<32x4xf32>
    %cst_71 = arith.constant dense<0.000000e+00> : vector<2x4xf32>
    %473 = tpu.matmul %471, %472, %cst_71 {dimension_numbers = #tpu.dot_dimension_numbers<[1], [0], [0], [1], [0, 0, 1, 1], [], []>} : vector<2x32xf32>, vector<32x4xf32>, vector<2x4xf32> -> vector<2x4xf32>
    %c0_72 = arith.constant 0 : index
    %c0_73 = arith.constant 0 : index
    %474 = vector.load %arg10[%c0_72, %c0_73] : memref<1x4xf32, #tpu.memory_space<vmem>>, vector<1x4xf32>
    %475 = vector.broadcast %474 : vector<1x4xf32> to vector<2x4xf32>
    %476 = arith.addf %473, %475 : vector<2x4xf32>
    %c0_74 = arith.constant 0 : index
    %c0_75 = arith.constant 0 : index
    %477 = vector.load %arg11[%c0_74, %c0_75] : memref<2x4xf32, #tpu.memory_space<vmem>>, vector<2x4xf32>
    tpu.vector_store %arg11[%c0_74, %c0_75], %476 {strides = array<i32>} : memref<2x4xf32, #tpu.memory_space<vmem>>, vector<2x4xf32>,
    return
  }
}

</mosaic_0001>

<bundles_post_ra>
// kernel: tpu_custom_call.1
= control target key start
LH: loop header
LB: loop body
LE: loop exit
PB: predicated region body
PF: predicated region fallthrough
CT: control target
= control target key end

     0   :  { %16 = vsyncpa [#allocation3], 0  ;;  %s3394_s0 = inlined_call_operand.hbm [shape: f32[2,8,8], index: 0, kind: input, shape index: {}]   ;;  %s3395_s1 = inlined_call_operand.vmem [shape: f32[8,96], index: 1, kind: input, shape index: {}]   ;;  %s3396_s2 = inlined_call_operand.vmem [shape: f32[32,96], index: 2, kind: input, shape index: {}]   ;;  %s3397_s3 = inlined_call_operand.vmem [shape: f32[1,96], index: 3, kind: input, shape index: {}]   ;;  %s3398_s4 = inlined_call_operand.vmem [shape: f32[1,32], index: 4, kind: input, shape index: {}]   ;;  %s3399_s5 = inlined_call_operand.hbm [shape: f32[32,96], index: 5, kind: input, shape index: {}]   ;;  %s3400_s6 = inlined_call_operand.hbm [shape: f32[32,96], index: 6, kind: input, shape index: {}]   ;;  %s3401_s7 = inlined_call_operand.vmem [shape: f32[1,96], index: 7, kind: input, shape index: {}]   ;;  %s3402_s8 = inlined_call_operand.vmem [shape: f32[1,32], index: 8, kind: input, shape index: {}]   ;;  %s3403_s9 = inlined_call_operand.vmem [shape: f32[32,4], index: 9, kind: input, shape index: {}]   ;;  %s3404_s10 = inlined_call_operand.vmem [shape: f32[1,4], index: 10, kind: input, shape index: {}]   ;;  %s3405_s11 = inlined_call_operand.hbm [shape: f32[2,4], index: 11, kind: output, shape index: {}]  }
   0x1   :  { %17 = vsyncpa [#allocation6], 0 }
   0x2   :  { %18 = vsyncpa [#allocation4], 0  ;;  %s2893_s17 = smov [#allocation5]   ;;  %s2894_s19 = smov [#allocation2]  }
   0x3   :  { %s44_s18 = sshll.u32 %s2893_s17, 4  ;;  %s24_s20 = sshll.u32 %s2894_s19, 4  ;;  %s45_s18 = int_to_ptr.vmem [resolvable:$true] %s44_s18  ;;  %s2965_s20 = int_to_ptr.vmem [resolvable:$true] %s24_s20 }
   0x4   :  { %s2799_s23 = scalar_lea.hbm %s3399_s5, 512 }
   0x5   :  { %p2800_p0 = scmp.ne.s32.totalorder %s3399_s5, %s2799_s23  ;;  %p2803_p1 = scmp.lt.u32.totalorder %s2799_s23, %s3399_s5 }
   0x7   :  { %p2805_p2 = pnand %p2803_p1, %p2800_p0 }
   0x9   :  { %2808 = shalt.err (!%p2805_p2)
}
   0xa   :  { %s2809_s28 = scalar_lea.vmem %s45_s18, 512  ;;  %p2814_p4 = scmp.lt.s32.totalorder %s45_s18, %s45_s18 }
   0xb   :  { %p2810_p3 = scmp.ne.s32.totalorder %s45_s18, %s2809_s28  ;;  %p2815_p5 = scmp.lt.s32.totalorder %s2809_s28, %s2809_s28 }
   0xd   :  { %p2816_p6 = por %p2815_p5, %p2814_p4 }
   0xf   :  { %p2817_p7 = pnand %p2816_p6, %p2810_p3 }
  0x11   :  { %2820 = shalt.err (!%p2817_p7)
}
  0x12   :  { %s2895_s29 = smov 128   ;;  %s2896_s30 = smov 8  }
  0x13   :  { %50 = dma.hbm_to_vmem [thread:$0]  %s3399_s5, 512, %s45_s18, [#allocation6], %s2895_s29, %s2895_s29, %s2896_s30  }
  0x14   :  { %s2821_s16 = scalar_lea.hbm %s3394_s0, 256 }
  0x15   :  { %p2822_p8 = scmp.ne.s32.totalorder %s3394_s0, %s2821_s16  ;;  %p2825_p9 = scmp.lt.u32.totalorder %s2821_s16, %s3394_s0 }
  0x17   :  { %p2827_p10 = pnand %p2825_p9, %p2822_p8 }
  0x19   :  { %2830 = shalt.err (!%p2827_p10)
}
  0x1a   :  { %s2831_s23 = scalar_lea.vmem %s2965_s20, 256  ;;  %p2836_p12 = scmp.lt.s32.totalorder %s2965_s20, %s2965_s20 }
  0x1b   :  { %p2832_p11 = scmp.ne.s32.totalorder %s2965_s20, %s2831_s23  ;;  %p2837_p13 = scmp.lt.s32.totalorder %s2831_s23, %s2831_s23 }
  0x1d   :  { %p2838_p0 = por %p2837_p13, %p2836_p12 }
  0x1f   :  { %p2839_p1 = pnand %p2838_p0, %p2832_p11 }
  0x21   :  { %2842 = shalt.err (!%p2839_p1)
}
  0x22   :  { %30 = dma.hbm_to_vmem [thread:$0]  %s3394_s0, 256, %s2965_s20, [#allocation3], %s2895_s29, %s2895_s29, %s2896_s30  }
  0x23   :  { %s2897_s24 = smov [#allocation7]   ;;  %s2843_s28 = scalar_lea.hbm %s3400_s6, 512 }
  0x24   :  { %s56_s25 = sshll.u32 %s2897_s24, 4  ;;  %p2844_p2 = scmp.ne.s32.totalorder %s3400_s6, %s2843_s28  ;;  %s57_s25 = int_to_ptr.vmem [resolvable:$true] %s56_s25 }
  0x25   :  { %p2847_p3 = scmp.lt.u32.totalorder %s2843_s28, %s3400_s6 }
  0x27   :  { %p2849_p4 = pnand %p2847_p3, %p2844_p2 }
  0x29   :  { %2852 = shalt.err (!%p2849_p4)
}
  0x2a   :  { %s2853_s16 = scalar_lea.vmem %s57_s25, 512  ;;  %p2858_p6 = scmp.lt.s32.totalorder %s57_s25, %s57_s25 }
  0x2b   :  { %p2854_p5 = scmp.ne.s32.totalorder %s57_s25, %s2853_s16  ;;  %p2859_p7 = scmp.lt.s32.totalorder %s2853_s16, %s2853_s16 }
  0x2d   :  { %p2860_p8 = por %p2859_p7, %p2858_p6 }
  0x2f   :  { %p2861_p9 = pnand %p2860_p8, %p2854_p5 }
  0x31   :  { %2864 = shalt.err (!%p2861_p9)
}
  0x32   :  { %62 = dma.hbm_to_vmem [thread:$0]  %s3400_s6, 512, %s57_s25, [#allocation6], %s2895_s29, %s2895_s29, %s2896_s30  }
  0x33   :  { %2887 = dma.done.wait [#allocation3], 256  }
  0x34   :  { %2888 = vsyncadd [#allocation3], 4294967040 }
  0x35   :  { %2889 = dma.done.wait [#allocation6], 1024  }
  0x36   :  { %2890 = vsyncadd [#allocation6], 4294966272  ;;  %v2898_v0 = vmov 0.0|0.0   ;;  %vm2899_vm0 = vmmov 0   ;;  %v2900_v1 = vmov 0.0   ;;  %v133_v2 = vld [vmem:[%s3396_s2] sm:$0xff] }
  0x37   :  { %2581 = vmatprep.subr.bf16.mxu1 %v2898_v0  ;;  %2391 = vmatprep.mubr.msk.f32.mxu1 %vm2899_vm0, %v2900_v1  ;;  %v134_v3 = vld [vmem:[%s3396_s2 + $0x8] sm:$0xff]  ;;  %v135_v4 = vld [vmem:[%s3396_s2 + $0x10] sm:$0xff]  ;;  %vm112_vm1 = vcmask 1040384   ;;  %v136_v6 = vld [vmem:[%s3396_s2 + $0x18] sm:$0xff]  ;;  %vm114_vm2 = vcmask 1041408   ;;  %vm116_vm3 = vcmask 1042432  }
  0x38   :  { %v3029_v5 = vpack.c.bf16 %v134_v3, %v133_v2  ;;  %v143_v7 = vld [vmem:[%s3395_s1] sm:$0xff]  ;;  %v81_v9 = vld [vmem:[#allocation2 + $0x8] sm:$0xff]  ;;  %vm118_vm4 = vcmask 1043456   ;;  %vm120_vm5 = vcmask 1044480   ;;  %v3041_v12 = vpack.c.bf16 %v136_v6, %v135_v4  ;;  %s2901_s1 = smov 64   ;;  %s2903_s26 = smov 32  }
  0x39   :  { %v80_v8 = vld [vmem:[#allocation2] sm:$0xff]  ;;  %2378 = vmatprep.subr.mxu0 %v143_v7  ;;  %v83_v13 = vrot.slane %v81_v9, 7  ;;  %v88_v14 = vrot.slane %v81_v9, 6  ;;  %v100_v17 = vrot.slane %v81_v9, 3  ;;  %v104_v19 = vrot.slane %v81_v9, 2 }
  0x3a   :  { %v86_v10 = vrot.slane %v80_v8, 7  ;;  %v2244_v11 = vld [vmem:[%s3398_s4] ss:$0 sm:$0xff]  ;;  %2583 = vmatpush3.bf16.msra.mxu1 %v3029_v5  ;;  %2379 = vmatpush3.msra.mxu0 %v143_v7  ;;  %v90_v15 = vrot.slane %v80_v8, 6  ;;  %v98_v16 = vrot.slane %v80_v8, 4  ;;  %v102_v18 = vrot.slane %v80_v8, 3 }
  0x3b   :  { %2584 = vmatprep.subr.bf16.mxu1 %v2898_v0  ;;  %314 = vrot.lane.b32.xlu0 %v2244_v11, %s2901_s1  ;;  %v92_v20 = vrot.slane %v81_v9, 5  ;;  %v113_v21 = vsel %vm112_vm1, %v80_v8, %v83_v13  ;;  %vm122_vm6 = vcmask 1045504   ;;  %v106_v22 = vrot.slane %v80_v8, 2  ;;  %v2245_v45 = vld [vmem:[%s3397_s3] ss:$0 sm:$0xff]  ;;  %s2902_s3 = smov 96  }
  0x3c   :  { %2587 = vmatprep.subr.bf16.mxu0 %v2898_v0  ;;  %v94_v23 = vrot.slane %v80_v8, 5  ;;  %v115_v24 = vsel %vm114_vm2, %v113_v21, %v86_v10  ;;  %v108_v25 = vrot.slane %v81_v9, 1  ;;  %v126_v26 = vsel %vm112_vm1, %v98_v16, %v100_v17 }
  0x3d   :  { %v96_v27 = vrot.slane %v81_v9, 4  ;;  %v117_v28 = vsel %vm116_vm3, %v115_v24, %v88_v14  ;;  %v110_v29 = vrot.slane %v80_v8, 1  ;;  %v127_v30 = vsel %vm114_vm2, %v126_v26, %v102_v18 }
  0x3e   :  { %2586 = vmatpush3.bf16.msra.mxu1 %v3041_v12  ;;  %v119_v31 = vsel %vm118_vm4, %v117_v28, %v90_v15  ;;  %vm124_vm7 = vcmask 1046528   ;;  %v128_v32 = vsel %vm116_vm3, %v127_v30, %v104_v19  ;;  %vm151_vm8 = vcmask 64512  }
  0x3f   :  { %2593 = vmatprep.subr.bf16.mxu1 %v2898_v0  ;;  %v121_v33 = vsel %vm120_vm5, %v119_v31, %v92_v20  ;;  %v129_v34 = vsel %vm118_vm4, %v128_v32, %v106_v22  ;;  %vm233_vm9 = vcmask 261120   ;;  %vm2226_vm10 = vcmask 25600  }
  0x40   :  { %v123_v35 = vsel %vm122_vm6, %v121_v33, %v94_v23  ;;  %v130_v36 = vsel %vm120_vm5, %v129_v34, %v108_v25 }
  0x41   :  { %2392 = vmatmul.mubr.f32.vlgmr.msra.gmra.mrb[0].mxu1 %v2900_v1  ;;  %v125_v37 = vsel %vm124_vm7, %v123_v35, %v96_v27  ;;  %v131_v38 = vsel %vm122_vm6, %v130_v36, %v110_v29 }
  0x42   :  { %2595 = vmatpush3.bf16.msra.mxu1 %v3029_v5  ;;  %2413 = vmatprep.mubr.msk.f32.mxu1 %vm2899_vm0, %v2900_v1  ;;  %v132_v39 = vsel %vm124_vm7, %v131_v38, %v81_v9 }
  0x43   :  { %2380 = vmatprep.mubr.msk.f32.mxu0 %vm151_vm8, %v125_v37  ;;  %2596 = vmatprep.subr.bf16.mxu1 %v2898_v0 }
  0x44   :  { %2381 = vmatmul.mubr.msk.f32.vlgmr.msra.gmra.mrb[0].mxu0 %vm151_vm8, %v132_v39 }
  0x45   :  { %2589 = vmatpush3.bf16.msra.mxu0 %v3029_v5  ;;  %2402 = vmatprep.mubr.msk.f32.mxu0 %vm2899_vm0, %v2900_v1 }
  0x46   :  { %2590 = vmatprep.subr.bf16.mxu0 %v2898_v0  ;;  %2598 = vmatpush3.bf16.msra.mxu1 %v3041_v12 }
  0x47   :  { %2605 = vmatprep.subr.bf16.mxu1 %v2898_v0 }
  0x49   :  { %2592 = vmatpush3.bf16.msra.mxu0 %v3041_v12 }
  0x4a   :  { %2599 = vmatprep.subr.bf16.mxu0 %v2898_v0 }
  0xad   :  { %v3073_v40 = vpop.permute.xlu0 %314 }
 0x114   :  { %v303_v41 = vpop.f32.mrb[0].mxu1 }
 0x115   :  { %v317_v42 = vadd.f32 %v3073_v40, %v303_v41  ;;  %v2393_v43 = vpop.f32.mrb[1].mxu1 }
 0x117   :  { %v2382_v44 = vpop.f32.mrb[0].mxu0  ;;  %319 = vrot.lane.b32.xlu0 %v317_v42, %s2901_s1 }
 0x118   :  { %v3080_v46 = vadd.f32 %v2382_v44, %v2245_v45  ;;  %v224_v47 = vpop.f32.mrb[1].mxu0 }
 0x119   :  { %v3082_v48 = vadd.f32 %v2245_v45, %v224_v47 }
 0x11b   :  { %v307_v49 = vadd.f32 %v303_v41, %v3082_v48 }
 0x11d   :  { %v2248_v50 = vmul.f32 -1.442695, %v307_v49 }
 0x11f   :  { %2703 = vpow2.f32 %v2248_v50 }
 0x129   :  { %v2704_v51 = vpop.eup %2703 }
 0x12a   :  { %v311_v52 = vadd.f32 1.0, %v2704_v51 }
 0x12c   :  { %2705 = vrcp.f32 %v311_v52 }
 0x136   :  { %v2706_v53 = vpop.eup %2705 }
 0x189   :  { %v320_v54 = vpop.permute.xlu0 %319 }
 0x18a   :  { %v322_v55 = vmul.f32 %v2706_v53, %v320_v54 }
 0x18c   :  { %324 = vrot.lane.b32.xlu1 %v322_v55, %s2901_s1 }
 0x1fe   :  { %v325_v56 = vpop.permute.xlu1 %324 }
 0x1ff   :  { %v327_v57 = vadd.f32 %v325_v56, %v3082_v48 }
 0x201   :  { %2707 = vtanh.f32 %v327_v57 }
 0x20b   :  { %v2708_v58 = vpop.eup %2707 }
 0x20c   :  { %v329_v59 = vsub.f32 0.0, %v2708_v58 }
 0x20e   :  { %331 = vrot.lane.b32.xlu1 %v329_v59, %s2902_s3 }
 0x280   :  { %v332_v60 = vpop.permute.xlu1 %331 }
 0x281   :  { %v334_v61 = vmul.f32 %v2706_v53, %v332_v60 }
 0x283   :  { %336 = vrot.lane.b32.xlu0 %v334_v61, %s2903_s26 }
 0x2f5   :  { %v337_v62 = vpop.permute.xlu0 %336 }
 0x2f6   :  { %v3089_v63 = vadd.f32 %v2708_v58, %v337_v62 }
 0x2f8   :  { %341 = vrot.lane.b32.xlu1 %v3089_v63, %s2901_s1 }
 0x36a   :  { %v342_v2 = vpop.permute.xlu1 %341 }
 0x36b   :  { %2403 = vmatmul.mubr.msk.f32.vlgmr.msra.gmra.mrb[2].mxu0 %vm233_vm9, %v342_v2 }
 0x36c   :  { %2601 = vmatpush3.bf16.msra.mxu0 %v3029_v5  ;;  %2424 = vmatprep.mubr.msk.f32.mxu0 %vm2899_vm0, %v2900_v1 }
 0x36d   :  { %2602 = vmatprep.subr.bf16.mxu0 %v2898_v0 }
 0x370   :  { %2604 = vmatpush3.bf16.msra.mxu0 %v3041_v12 }
 0x371   :  { %2611 = vmatprep.subr.bf16.mxu0 %v2898_v0 }
 0x43e   :  { %v411_v3 = vpop.f32.mrb[2].mxu0 }
 0x43f   :  { %v425_v4 = vadd.f32 %v411_v3, %v3073_v40  ;;  %v2404_v6 = vpop.f32.mrb[3].mxu0  ;;  %v416_v8 = vrot.slane %v411_v3, 6 }
 0x441   :  { %v427_v7 = vrot.slane %v425_v4, 6  ;;  %v418_v9 = vadd.f32 %v416_v8, %v3082_v48 }
 0x443   :  { %428 = vrot.lane.b32.xlu0 %v427_v7, %s2901_s1  ;;  %v2250_v10 = vmul.f32 -1.442695, %v418_v9 }
 0x445   :  { %2709 = vpow2.f32 %v2250_v10 }
 0x44f   :  { %v2710_v11 = vpop.eup %2709 }
 0x450   :  { %v422_v13 = vadd.f32 1.0, %v2710_v11 }
 0x452   :  { %2711 = vrcp.f32 %v422_v13 }
 0x45c   :  { %v2712_v14 = vpop.eup %2711 }
 0x4b5   :  { %v429_v15 = vpop.permute.xlu0 %428 }
 0x4b6   :  { %v431_v16 = vmul.f32 %v2712_v14, %v429_v15 }
 0x4b8   :  { %433 = vrot.lane.b32.xlu1 %v431_v16, %s2901_s1 }
 0x52a   :  { %v434_v17 = vpop.permute.xlu1 %433 }
 0x52b   :  { %v436_v18 = vadd.f32 %v434_v17, %v3082_v48 }
 0x52d   :  { %2713 = vtanh.f32 %v436_v18 }
 0x537   :  { %v2714_v19 = vpop.eup %2713 }
 0x538   :  { %v439_v20 = vrot.slane %v2714_v19, 2 }
 0x53a   :  { %v441_v21 = vsub.f32 %v3089_v63, %v439_v20 }
 0x53c   :  { %v443_v22 = vrot.slane %v441_v21, 6 }
 0x53e   :  { %444 = vrot.lane.b32.xlu0 %v443_v22, %s2902_s3 }
 0x5b0   :  { %v445_v23 = vpop.permute.xlu0 %444 }
 0x5b1   :  { %v447_v24 = vmul.f32 %v2712_v14, %v445_v23 }
 0x5b3   :  { %449 = vrot.lane.b32.xlu1 %v447_v24, %s2903_s26 }
 0x625   :  { %v450_v25 = vpop.permute.xlu1 %449 }
 0x626   :  { %v3108_v26 = vadd.f32 %v2714_v19, %v450_v25 }
 0x628   :  { %v454_v27 = vrot.slane %v3108_v26, 2 }
 0x62a   :  { %455 = vrot.lane.b32.xlu0 %v454_v27, %s2901_s1 }
 0x69c   :  { %v456_v28 = vpop.permute.xlu0 %455 }
 0x69d   :  { %2414 = vmatmul.mubr.msk.f32.vlgmr.msra.gmra.mrb[2].mxu1 %vm233_vm9, %v456_v28 }
 0x69e   :  { %2607 = vmatpush3.bf16.msra.mxu1 %v3029_v5  ;;  %2435 = vmatprep.mubr.msk.f32.mxu1 %vm2899_vm0, %v2900_v1 }
 0x69f   :  { %2608 = vmatprep.subr.bf16.mxu1 %v2898_v0 }
 0x6a2   :  { %2610 = vmatpush3.bf16.msra.mxu1 %v3041_v12 }
 0x6a3   :  { %2617 = vmatprep.subr.bf16.mxu1 %v2898_v0 }
 0x770   :  { %v525_v29 = vpop.f32.mrb[2].mxu1 }
 0x771   :  { %v539_v30 = vadd.f32 %v525_v29, %v3073_v40  ;;  %v2415_v31 = vpop.f32.mrb[3].mxu1  ;;  %v530_v33 = vrot.slane %v525_v29, 4 }
 0x773   :  { %v541_v32 = vrot.slane %v539_v30, 4  ;;  %v532_v34 = vadd.f32 %v530_v33, %v3082_v48 }
 0x775   :  { %542 = vrot.lane.b32.xlu1 %v541_v32, %s2901_s1  ;;  %v2252_v35 = vmul.f32 -1.442695, %v532_v34 }
 0x777   :  { %2715 = vpow2.f32 %v2252_v35 }
 0x781   :  { %v2716_v36 = vpop.eup %2715 }
 0x782   :  { %v536_v37 = vadd.f32 1.0, %v2716_v36 }
 0x784   :  { %2717 = vrcp.f32 %v536_v37 }
 0x78e   :  { %v2718_v38 = vpop.eup %2717 }
 0x7e7   :  { %v543_v39 = vpop.permute.xlu1 %542 }
 0x7e8   :  { %v545_v41 = vmul.f32 %v2718_v38, %v543_v39 }
 0x7ea   :  { %547 = vrot.lane.b32.xlu0 %v545_v41, %s2901_s1 }
 0x85c   :  { %v548_v42 = vpop.permute.xlu0 %547 }
 0x85d   :  { %v550_v43 = vadd.f32 %v548_v42, %v3082_v48 }
 0x85f   :  { %2719 = vtanh.f32 %v550_v43 }
 0x869   :  { %v2720_v44 = vpop.eup %2719 }
 0x86a   :  { %v553_v45 = vrot.slane %v2720_v44, 2 }
 0x86c   :  { %v555_v47 = vsub.f32 %v3108_v26, %v553_v45 }
 0x86e   :  { %v557_v49 = vrot.slane %v555_v47, 6 }
 0x870   :  { %558 = vrot.lane.b32.xlu1 %v557_v49, %s2902_s3 }
 0x8e2   :  { %v559_v50 = vpop.permute.xlu1 %558 }
 0x8e3   :  { %v561_v51 = vmul.f32 %v2718_v38, %v559_v50 }
 0x8e5   :  { %563 = vrot.lane.b32.xlu0 %v561_v51, %s2903_s26 }
 0x957   :  { %v564_v52 = vpop.permute.xlu0 %563 }
 0x958   :  { %v3127_v53 = vadd.f32 %v2720_v44, %v564_v52 }
 0x95a   :  { %v568_v54 = vrot.slane %v3127_v53, 4 }
 0x95c   :  { %569 = vrot.lane.b32.xlu1 %v568_v54, %s2901_s1 }
 0x9ce   :  { %v570_v55 = vpop.permute.xlu1 %569 }
 0x9cf   :  { %2425 = vmatmul.mubr.msk.f32.vlgmr.msra.gmra.mrb[4].mxu0 %vm233_vm9, %v570_v55 }
 0x9d0   :  { %2613 = vmatpush3.bf16.msra.mxu0 %v3029_v5  ;;  %2446 = vmatprep.mubr.msk.f32.mxu0 %vm2899_vm0, %v2900_v1 }
 0x9d1   :  { %2614 = vmatprep.subr.bf16.mxu0 %v2898_v0 }
 0x9d4   :  { %2616 = vmatpush3.bf16.msra.mxu0 %v3041_v12 }
 0x9d5   :  { %2623 = vmatprep.subr.bf16.mxu0 %v2898_v0 }
 0xaa2   :  { %v639_v56 = vpop.f32.mrb[4].mxu0 }
 0xaa3   :  { %v653_v57 = vadd.f32 %v639_v56, %v3073_v40  ;;  %v2426_v58 = vpop.f32.mrb[5].mxu0  ;;  %v644_v60 = vrot.slane %v639_v56, 2 }
 0xaa5   :  { %v655_v59 = vrot.slane %v653_v57, 2  ;;  %v646_v61 = vadd.f32 %v644_v60, %v3082_v48 }
 0xaa7   :  { %656 = vrot.lane.b32.xlu0 %v655_v59, %s2901_s1  ;;  %v2254_v62 = vmul.f32 -1.442695, %v646_v61 }
 0xaa9   :  { %2721 = vpow2.f32 %v2254_v62 }
 0xab3   :  { %v2722_v2 = vpop.eup %2721 }
 0xab4   :  { %v650_v3 = vadd.f32 1.0, %v2722_v2 }
 0xab6   :  { %2723 = vrcp.f32 %v650_v3 }
 0xac0   :  { %v2724_v4 = vpop.eup %2723 }
 0xb19   :  { %v657_v6 = vpop.permute.xlu0 %656 }
 0xb1a   :  { %v659_v7 = vmul.f32 %v2724_v4, %v657_v6 }
 0xb1c   :  { %661 = vrot.lane.b32.xlu1 %v659_v7, %s2901_s1 }
 0xb8e   :  { %v662_v8 = vpop.permute.xlu1 %661 }
 0xb8f   :  { %v664_v9 = vadd.f32 %v662_v8, %v3082_v48 }
 0xb91   :  { %2725 = vtanh.f32 %v664_v9 }
 0xb9b   :  { %v2726_v10 = vpop.eup %2725 }
 0xb9c   :  { %v667_v11 = vrot.slane %v2726_v10, 2 }
 0xb9e   :  { %v669_v13 = vsub.f32 %v3127_v53, %v667_v11 }
 0xba0   :  { %v671_v14 = vrot.slane %v669_v13, 6 }
 0xba2   :  { %672 = vrot.lane.b32.xlu0 %v671_v14, %s2902_s3 }
 0xc14   :  { %v673_v15 = vpop.permute.xlu0 %672 }
 0xc15   :  { %v675_v16 = vmul.f32 %v2724_v4, %v673_v15 }
 0xc17   :  { %677 = vrot.lane.b32.xlu1 %v675_v16, %s2903_s26 }
 0xc89   :  { %v678_v17 = vpop.permute.xlu1 %677 }
 0xc8a   :  { %v3146_v18 = vadd.f32 %v2726_v10, %v678_v17 }
 0xc8c   :  { %v682_v19 = vrot.slane %v3146_v18, 6 }
 0xc8e   :  { %683 = vrot.lane.b32.xlu0 %v682_v19, %s2901_s1 }
 0xd00   :  { %v684_v48 = vpop.permute.xlu0 %683 }
 0xd01   :  { %2436 = vmatmul.mubr.msk.f32.vlgmr.msra.gmra.mrb[4].mxu1 %vm233_vm9, %v684_v48 }
 0xd02   :  { %2619 = vmatpush3.bf16.msra.mxu1 %v3029_v5  ;;  %2457 = vmatprep.mubr.msk.f32.mxu1 %vm2899_vm0, %v2900_v1 }
 0xd03   :  { %2620 = vmatprep.subr.bf16.mxu1 %v2898_v0 }
 0xd06   :  { %2622 = vmatpush3.bf16.msra.mxu1 %v3041_v12 }
 0xdd4   :  { %v753_v20 = vpop.f32.mrb[4].mxu1 }
 0xdd5   :  { %v764_v21 = vadd.f32 %v753_v20, %v3073_v40  ;;  %v2437_v22 = vpop.f32.mrb[5].mxu1  ;;  %v757_v23 = vadd.f32 %v753_v20, %v3080_v46 }
 0xdd7   :  { %766 = vrot.lane.b32.xlu1 %v764_v21, %s2901_s1  ;;  %v2256_v24 = vmul.f32 -1.442695, %v757_v23 }
 0xdd9   :  { %2727 = vpow2.f32 %v2256_v24 }
 0xde3   :  { %v2728_v25 = vpop.eup %2727 }
 0xde4   :  { %v761_v27 = vadd.f32 1.0, %v2728_v25 }
 0xde6   :  { %2729 = vrcp.f32 %v761_v27 }
 0xdf0   :  { %v2730_v28 = vpop.eup %2729 }
 0xe49   :  { %v767_v29 = vpop.permute.xlu1 %766 }
 0xe4a   :  { %v769_v30 = vmul.f32 %v2730_v28, %v767_v29 }
 0xe4c   :  { %771 = vrot.lane.b32.xlu0 %v769_v30, %s2901_s1 }
 0xebe   :  { %v772_v31 = vpop.permute.xlu0 %771 }
 0xebf   :  { %v774_v32 = vadd.f32 %v772_v31, %v3080_v46 }
 0xec1   :  { %2731 = vtanh.f32 %v774_v32 }
 0xecb   :  { %v2732_v33 = vpop.eup %2731 }
 0xecc   :  { %v777_v34 = vrot.slane %v2732_v33, 2 }
 0xece   :  { %v779_v35 = vsub.f32 %v3146_v18, %v777_v34 }
 0xed0   :  { %v781_v36 = vrot.slane %v779_v35, 6 }
 0xed2   :  { %782 = vrot.lane.b32.xlu1 %v781_v36, %s2902_s3 }
 0xf44   :  { %v783_v37 = vpop.permute.xlu1 %782 }
 0xf45   :  { %v785_v38 = vmul.f32 %v2730_v28, %v783_v37 }
 0xf47   :  { %787 = vrot.lane.b32.xlu0 %v785_v38, %s2903_s26 }
 0xfb9   :  { %v788_v39 = vpop.permute.xlu0 %787 }
 0xfba   :  { %v3164_v41 = vadd.f32 %v2732_v33, %v788_v39 }
 0xfbc   :  { %792 = vrot.lane.b32.xlu1 %v3164_v41, %s2901_s1 }
0x102e   :  { %v793_v42 = vpop.permute.xlu1 %792 }
0x102f   :  { %2447 = vmatmul.mubr.msk.f32.vlgmr.msra.gmra.mrb[6].mxu0 %vm233_vm9, %v793_v42 }
0x1030   :  { %2625 = vmatpush3.bf16.msra.mxu0 %v3029_v5  ;;  %2468 = vmatprep.mubr.msk.f32.mxu0 %vm2899_vm0, %v2900_v1 }
0x1031   :  { %2626 = vmatprep.subr.bf16.mxu0 %v2898_v0 }
0x1034   :  { %2628 = vmatpush3.bf16.msra.mxu0 %v3041_v12 }
0x1035   :  { %2637 = vmatprep.subr.bf16.mxu0 %v2898_v0 }
0x1102   :  { %v862_v43 = vpop.f32.mrb[6].mxu0 }
0x1103   :  { %v876_v44 = vadd.f32 %v862_v43, %v3073_v40  ;;  %v2448_v45 = vpop.f32.mrb[7].mxu0  ;;  %v867_v49 = vrot.slane %v862_v43, 6 }
0x1105   :  { %v878_v47 = vrot.slane %v876_v44, 6  ;;  %v869_v50 = vadd.f32 %v867_v49, %v3080_v46 }
0x1107   :  { %879 = vrot.lane.b32.xlu0 %v878_v47, %s2901_s1  ;;  %v2258_v5 = vmul.f32 -1.442695, %v869_v50 }
0x1109   :  { %2733 = vpow2.f32 %v2258_v5 }
0x1113   :  { %v2734_v51 = vpop.eup %2733 }
0x1114   :  { %v873_v52 = vadd.f32 1.0, %v2734_v51 }
0x1116   :  { %2735 = vrcp.f32 %v873_v52 }
0x1120   :  { %v2736_v54 = vpop.eup %2735 }
0x1179   :  { %v880_v55 = vpop.permute.xlu0 %879 }
0x117a   :  { %v882_v12 = vmul.f32 %v2736_v54, %v880_v55  ;;  %v1132_v55 = vsel %vm114_vm2, %v3089_v63, %v3108_v26 }
0x117c   :  { %884 = vrot.lane.b32.xlu1 %v882_v12, %s2901_s1  ;;  %v1133_v12 = vsel %vm118_vm4, %v1132_v55, %v3127_v53 }
0x11ee   :  { %v885_v56 = vpop.permute.xlu1 %884 }
0x11ef   :  { %v887_v57 = vadd.f32 %v885_v56, %v3080_v46  ;;  %v1134_v56 = vsel %vm122_vm6, %v1133_v12, %v3146_v18 }
0x11f1   :  { %2737 = vtanh.f32 %v887_v57  ;;  %v1139_v57 = vld [vmem:[#allocation7 + $0x8] sm:$0xff] }
0x11fb   :  { %v2738_v58 = vpop.eup %2737 }
0x11fc   :  { %v890_v59 = vrot.slane %v2738_v58, 2 }
0x11fe   :  { %v892_v60 = vsub.f32 %v3164_v41, %v890_v59 }
0x1200   :  { %v894_v61 = vrot.slane %v892_v60, 6  ;;  %v1141_v60 = vld [vmem:[#allocation7 + $0x18] sm:$0xff] }
0x1202   :  { %895 = vrot.lane.b32.xlu0 %v894_v61, %s2902_s3  ;;  %v1148_v61 = vld [vmem:[#allocation5] sm:$0xff] }
0x1274   :  { %v896_v62 = vpop.permute.xlu0 %895 }
0x1275   :  { %v898_v2 = vmul.f32 %v2736_v54, %v896_v62  ;;  %v1149_v62 = vld [vmem:[#allocation5 + $0x8] sm:$0xff] }
0x1277   :  { %900 = vrot.lane.b32.xlu1 %v898_v2, %s2903_s26  ;;  %v2629_v2 = vpack.c.bf16 %v1149_v62, %v1148_v61 }
0x1279   :  { %2630 = vmatprep.subr.bf16.mxu1 %v2629_v2 }
0x12e9   :  { %v901_v3 = vpop.permute.xlu1 %900 }
0x12ea   :  { %v3183_v4 = vadd.f32 %v2738_v58, %v901_v3  ;;  %v1140_v58 = vld [vmem:[#allocation7 + $0x10] sm:$0xff] }
0x12eb   :  { %v1150_v3 = vld [vmem:[#allocation5 + $0x10] sm:$0xff]  ;;  %v3221_v63 = vpack.c.bf16 %v1141_v60, %v1140_v58 }
0x12ec   :  { %v905_v6 = vrot.slane %v3183_v4, 2 }
0x12ee   :  { %906 = vrot.lane.b32.xlu0 %v905_v6, %s2901_s1  ;;  %v1151_v6 = vld [vmem:[#allocation5 + $0x18] sm:$0xff] }
0x12ef   :  { %v2633_v26 = vpack.c.bf16 %v1151_v6, %v1150_v3 }
0x1360   :  { %v907_v7 = vpop.permute.xlu0 %906 }
0x1361   :  { %2458 = vmatmul.mubr.msk.f32.vlgmr.msra.gmra.mrb[6].mxu1 %vm233_vm9, %v907_v7 }
0x1362   :  { %2632 = vmatpush3.bf16.msra.mxu1 %v2629_v2 }
0x1363   :  { %2634 = vmatprep.subr.bf16.mxu1 %v2633_v26 }
0x1366   :  { %2636 = vmatpush3.bf16.msra.mxu1 %v2633_v26 }
0x1367   :  { %2643 = vmatprep.subr.bf16.mxu1 %v2898_v0 }
0x1434   :  { %v976_v8 = vpop.f32.mrb[6].mxu1 }
0x1435   :  { %v990_v9 = vadd.f32 %v976_v8, %v3073_v40  ;;  %v2459_v10 = vpop.f32.mrb[7].mxu1  ;;  %v981_v13 = vrot.slane %v976_v8, 4  ;;  %v2263_v8 = vld [vmem:[%s3402_s8] ss:$0 sm:$0xff] }
0x1436   :  { %v1135_v10 = vsel %vm114_vm2, %v3164_v41, %v3183_v4  ;;  %v2264_v41 = vld [vmem:[%s3401_s7] ss:$0 sm:$0xff] }
0x1437   :  { %v992_v11 = vrot.slane %v990_v9, 4  ;;  %v983_v14 = vadd.f32 %v981_v13, %v3080_v46 }
0x1439   :  { %993 = vrot.lane.b32.xlu1 %v992_v11, %s2901_s1  ;;  %v2260_v15 = vmul.f32 -1.442695, %v983_v14 }
0x143b   :  { %2739 = vpow2.f32 %v2260_v15 }
0x1445   :  { %v2740_v16 = vpop.eup %2739 }
0x1446   :  { %v987_v17 = vadd.f32 1.0, %v2740_v16 }
0x1448   :  { %2741 = vrcp.f32 %v987_v17 }
0x1452   :  { %v2742_v19 = vpop.eup %2741 }
0x14ab   :  { %v994_v48 = vpop.permute.xlu1 %993 }
0x14ac   :  { %v996_v20 = vmul.f32 %v2742_v19, %v994_v48 }
0x14ae   :  { %998 = vrot.lane.b32.xlu0 %v996_v20, %s2901_s1 }
0x1520   :  { %v999_v21 = vpop.permute.xlu0 %998 }
0x1521   :  { %v1001_v22 = vadd.f32 %v999_v21, %v3080_v46 }
0x1523   :  { %2743 = vtanh.f32 %v1001_v22 }
0x152d   :  { %v2744_v23 = vpop.eup %2743 }
0x152e   :  { %v1004_v24 = vrot.slane %v2744_v23, 2 }
0x1530   :  { %v1006_v25 = vsub.f32 %v3183_v4, %v1004_v24 }
0x1532   :  { %v1008_v27 = vrot.slane %v1006_v25, 6 }
0x1534   :  { %1009 = vrot.lane.b32.xlu1 %v1008_v27, %s2902_s3 }
0x15a6   :  { %v1010_v28 = vpop.permute.xlu1 %1009 }
0x15a7   :  { %v1012_v29 = vmul.f32 %v2742_v19, %v1010_v28 }
0x15a9   :  { %1014 = vrot.lane.b32.xlu0 %v1012_v29, %s2903_s26 }
0x161b   :  { %v1015_v30 = vpop.permute.xlu0 %1014 }
0x161c   :  { %v3196_v31 = vadd.f32 %v2744_v23, %v1015_v30 }
0x161e   :  { %v1019_v32 = vrot.slane %v3196_v31, 4  ;;  %v1136_v13 = vsel %vm118_vm4, %v1135_v10, %v3196_v31 }
0x1620   :  { %1020 = vrot.lane.b32.xlu1 %v1019_v32, %s2901_s1 }
0x1692   :  { %v1021_v33 = vpop.permute.xlu1 %1020 }
0x1693   :  { %2469 = vmatmul.mubr.msk.f32.vlgmr.msra.gmra.mrb[8].mxu0 %vm233_vm9, %v1021_v33 }
0x1694   :  { %2490 = vmatprep.mubr.msk.f32.mxu0 %vm2899_vm0, %v2900_v1 }
0x1766   :  { %v1090_v34 = vpop.f32.mrb[8].mxu0 }
0x1767   :  { %v1104_v35 = vadd.f32 %v1090_v34, %v3073_v40  ;;  %v2470_v36 = vpop.f32.mrb[9].mxu0  ;;  %v1095_v38 = vrot.slane %v1090_v34, 2 }
0x1769   :  { %v1106_v37 = vrot.slane %v1104_v35, 2  ;;  %v1097_v39 = vadd.f32 %v1095_v38, %v3080_v46 }
0x176b   :  { %1107 = vrot.lane.b32.xlu0 %v1106_v37, %s2901_s1  ;;  %v2262_v42 = vmul.f32 -1.442695, %v1097_v39 }
0x176d   :  { %2745 = vpow2.f32 %v2262_v42 }
0x1777   :  { %v2746_v43 = vpop.eup %2745 }
0x1778   :  { %v1101_v44 = vadd.f32 1.0, %v2746_v43 }
0x177a   :  { %2747 = vrcp.f32 %v1101_v44 }
0x1784   :  { %v2748_v45 = vpop.eup %2747 }
0x17dd   :  { %v1108_v47 = vpop.permute.xlu0 %1107 }
0x17de   :  { %v1110_v49 = vmul.f32 %v2748_v45, %v1108_v47 }
0x17e0   :  { %1112 = vrot.lane.b32.xlu1 %v1110_v49, %s2901_s1 }
0x1852   :  { %v1113_v50 = vpop.permute.xlu1 %1112 }
0x1853   :  { %v1115_v40 = vadd.f32 %v1113_v50, %v3080_v46  ;;  %v1138_v46 = vld [vmem:[#allocation7] sm:$0xff] }
0x1854   :  { %v3218_v59 = vpack.c.bf16 %v1139_v57, %v1138_v46 }
0x1855   :  { %2749 = vtanh.f32 %v1115_v40 }
0x1856   :  { %2639 = vmatpush3.bf16.msra.mxu0 %v3218_v59 }
0x1857   :  { %2640 = vmatprep.subr.bf16.mxu0 %v2898_v0 }
0x185a   :  { %2642 = vmatpush3.bf16.msra.mxu0 %v3221_v63 }
0x185b   :  { %2649 = vmatprep.subr.bf16.mxu0 %v2898_v0 }
0x185d   :  { %2491 = vmatmul.mubr.f32.vlgmr.msra.gmra.mrb[10].mxu0 %v2900_v1 }
0x185e   :  { %2651 = vmatpush3.bf16.msra.mxu0 %v3218_v59  ;;  %2512 = vmatprep.mubr.msk.f32.mxu0 %vm2899_vm0, %v2900_v1 }
0x185f   :  { %v2750_v5 = vpop.eup %2749  ;;  %2652 = vmatprep.subr.bf16.mxu0 %v2898_v0 }
0x1860   :  { %v1118_v51 = vrot.slane %v2750_v5, 2 }
0x1862   :  { %v1120_v52 = vsub.f32 %v3196_v31, %v1118_v51  ;;  %2654 = vmatpush3.bf16.msra.mxu0 %v3221_v63 }
0x1863   :  { %2661 = vmatprep.subr.bf16.mxu0 %v2898_v0 }
0x1864   :  { %v1122_v54 = vrot.slane %v1120_v52, 6 }
0x1866   :  { %1123 = vrot.lane.b32.xlu0 %v1122_v54, %s2902_s3 }
0x186a   :  { %1161 = vrot.lane.b32.xlu0 %v1134_v56, %s2901_s1 }
0x186e   :  { %1321 = vrot.lane.b32.xlu0 %v2263_v8, %s2901_s1 }
0x18d8   :  { %v1124_v53 = vpop.permute.xlu0 %1123 }
0x18d9   :  { %v1126_v18 = vmul.f32 %v2748_v45, %v1124_v53 }
0x18db   :  { %1128 = vrot.lane.b32.xlu1 %v1126_v18, %s2903_s26 }
0x18dc   :  { %v1162_v7 = vpop.permute.xlu0 %1161 }
0x18dd   :  { %2479 = vmatprep.mubr.msk.f32.mxu1 %vm233_vm9, %v1162_v7 }
0x18e0   :  { %v3247_v17 = vpop.permute.xlu0 %1321 }
0x1930   :  { %v1310_v15 = vpop.f32.mrb[10].mxu0 }
0x1931   :  { %v2492_v16 = vpop.f32.mrb[11].mxu0  ;;  %v1324_v19 = vadd.f32 %v3247_v17, %v1310_v15 }
0x194d   :  { %v1129_v9 = vpop.permute.xlu1 %1128 }
0x194e   :  { %v1131_v11 = vadd.f32 %v2750_v5, %v1129_v9 }
0x1950   :  { %v1137_v14 = vsel %vm122_vm6, %v1136_v13, %v1131_v11 }
0x1951   :  { %1163 = vrot.lane.b32.xlu1 %v1137_v14, %s2901_s1 }
0x1955   :  { %1326 = vrot.lane.b32.xlu1 %v1324_v19, %s2901_s1 }
0x19c3   :  { %v1164_v48 = vpop.permute.xlu1 %1163 }
0x19c4   :  { %2480 = vmatmul.mubr.msk.f32.vlgmr.msra.gmra.mrb[8].mxu1 %vm233_vm9, %v1164_v48 }
0x19c5   :  { %2645 = vmatpush3.bf16.msra.mxu1 %v3218_v59  ;;  %2501 = vmatprep.mubr.msk.f32.mxu1 %vm2899_vm0, %v2900_v1 }
0x19c6   :  { %2646 = vmatprep.subr.bf16.mxu1 %v2898_v0 }
0x19c7   :  { %v1327_v28 = vpop.permute.xlu1 %1326 }
0x19c9   :  { %2648 = vmatpush3.bf16.msra.mxu1 %v3221_v63 }
0x19ca   :  { %2655 = vmatprep.subr.bf16.mxu1 %v2898_v0 }
0x1a97   :  { %v2481_v4 = vpop.f32.mrb[8].mxu1 }
0x1a98   :  { %v3261_v20 = vadd.f32 %v2481_v4, %v2264_v41  ;;  %v1235_v21 = vpop.f32.mrb[9].mxu1 }
0x1a99   :  { %v3263_v22 = vadd.f32 %v2264_v41, %v1235_v21 }
0x1a9b   :  { %v1314_v23 = vadd.f32 %v1310_v15, %v3263_v22 }
0x1a9d   :  { %v2267_v24 = vmul.f32 -1.442695, %v1314_v23 }
0x1a9f   :  { %2751 = vpow2.f32 %v2267_v24 }
0x1aa9   :  { %v2752_v25 = vpop.eup %2751 }
0x1aaa   :  { %v1318_v27 = vadd.f32 1.0, %v2752_v25 }
0x1aac   :  { %2753 = vrcp.f32 %v1318_v27 }
0x1ab6   :  { %v2754_v29 = vpop.eup %2753 }
0x1ab7   :  { %v1329_v30 = vmul.f32 %v2754_v29, %v1327_v28 }
0x1ab9   :  { %1331 = vrot.lane.b32.xlu0 %v1329_v30, %s2901_s1 }
0x1b2b   :  { %v1332_v31 = vpop.permute.xlu0 %1331 }
0x1b2c   :  { %v1334_v32 = vadd.f32 %v1332_v31, %v3263_v22 }
0x1b2e   :  { %2755 = vtanh.f32 %v1334_v32 }
0x1b38   :  { %v2756_v33 = vpop.eup %2755 }
0x1b39   :  { %v1336_v34 = vsub.f32 0.0, %v2756_v33 }
0x1b3b   :  { %1338 = vrot.lane.b32.xlu1 %v1336_v34, %s2902_s3 }
0x1bad   :  { %v1339_v35 = vpop.permute.xlu1 %1338 }
0x1bae   :  { %v1341_v36 = vmul.f32 %v2754_v29, %v1339_v35 }
0x1bb0   :  { %1343 = vrot.lane.b32.xlu0 %v1341_v36, %s2903_s26 }
0x1c22   :  { %v1344_v37 = vpop.permute.xlu0 %1343 }
0x1c23   :  { %v1346_v38 = vadd.f32 %v2756_v33, %v1344_v37 }
0x1c25   :  { %1348 = vrot.lane.b32.xlu1 %v1346_v38, %s2901_s1 }
0x1c97   :  { %v1349_v39 = vpop.permute.xlu1 %1348 }
0x1c98   :  { %2502 = vmatmul.mubr.msk.f32.vlgmr.msra.gmra.mrb[10].mxu1 %vm233_vm9, %v1349_v39 }
0x1c99   :  { %2657 = vmatpush3.bf16.msra.mxu1 %v3218_v59  ;;  %2523 = vmatprep.mubr.msk.f32.mxu1 %vm2899_vm0, %v2900_v1 }
0x1c9a   :  { %2658 = vmatprep.subr.bf16.mxu1 %v2898_v0 }
0x1c9d   :  { %2660 = vmatpush3.bf16.msra.mxu1 %v3221_v63 }
0x1c9e   :  { %2667 = vmatprep.subr.bf16.mxu1 %v2898_v0 }
0x1d6b   :  { %v1418_v42 = vpop.f32.mrb[10].mxu1 }
0x1d6c   :  { %v1432_v43 = vadd.f32 %v1418_v42, %v3247_v17  ;;  %v2503_v44 = vpop.f32.mrb[11].mxu1  ;;  %v1423_v47 = vrot.slane %v1418_v42, 6 }
0x1d6e   :  { %v1434_v45 = vrot.slane %v1432_v43, 6  ;;  %v1425_v49 = vadd.f32 %v1423_v47, %v3263_v22 }
0x1d70   :  { %1435 = vrot.lane.b32.xlu0 %v1434_v45, %s2901_s1  ;;  %v2269_v50 = vmul.f32 -1.442695, %v1425_v49 }
0x1d72   :  { %2757 = vpow2.f32 %v2269_v50 }
0x1d7c   :  { %v2758_v40 = vpop.eup %2757 }
0x1d7d   :  { %v1429_v5 = vadd.f32 1.0, %v2758_v40 }
0x1d7f   :  { %2759 = vrcp.f32 %v1429_v5 }
0x1d89   :  { %v2760_v51 = vpop.eup %2759 }
0x1de2   :  { %v1436_v52 = vpop.permute.xlu0 %1435 }
0x1de3   :  { %v1438_v54 = vmul.f32 %v2760_v51, %v1436_v52 }
0x1de5   :  { %1440 = vrot.lane.b32.xlu1 %v1438_v54, %s2901_s1 }
0x1e57   :  { %v1441_v55 = vpop.permute.xlu1 %1440 }
0x1e58   :  { %v1443_v12 = vadd.f32 %v1441_v55, %v3263_v22 }
0x1e5a   :  { %2761 = vtanh.f32 %v1443_v12 }
0x1e64   :  { %v2762_v56 = vpop.eup %2761 }
0x1e65   :  { %v1446_v46 = vrot.slane %v2762_v56, 2 }
0x1e67   :  { %v1448_v57 = vsub.f32 %v1346_v38, %v1446_v46 }
0x1e69   :  { %v1450_v58 = vrot.slane %v1448_v57, 6 }
0x1e6b   :  { %1451 = vrot.lane.b32.xlu0 %v1450_v58, %s2902_s3 }
0x1edd   :  { %v1452_v60 = vpop.permute.xlu0 %1451 }
0x1ede   :  { %v1454_v61 = vmul.f32 %v2760_v51, %v1452_v60 }
0x1ee0   :  { %1456 = vrot.lane.b32.xlu1 %v1454_v61, %s2903_s26 }
0x1f52   :  { %v1457_v62 = vpop.permute.xlu1 %1456 }
0x1f53   :  { %v1459_v2 = vadd.f32 %v2762_v56, %v1457_v62 }
0x1f55   :  { %v1461_v3 = vrot.slane %v1459_v2, 2 }
0x1f57   :  { %1462 = vrot.lane.b32.xlu0 %v1461_v3, %s2901_s1 }
0x1fc9   :  { %v1463_v6 = vpop.permute.xlu0 %1462 }
0x1fca   :  { %2513 = vmatmul.mubr.msk.f32.vlgmr.msra.gmra.mrb[12].mxu0 %vm233_vm9, %v1463_v6 }
0x1fcb   :  { %2663 = vmatpush3.bf16.msra.mxu0 %v3218_v59  ;;  %2534 = vmatprep.mubr.msk.f32.mxu0 %vm2899_vm0, %v2900_v1 }
0x1fcc   :  { %2664 = vmatprep.subr.bf16.mxu0 %v2898_v0 }
0x1fcf   :  { %2666 = vmatpush3.bf16.msra.mxu0 %v3221_v63 }
0x1fd0   :  { %2673 = vmatprep.subr.bf16.mxu0 %v2898_v0 }
0x209d   :  { %v1532_v26 = vpop.f32.mrb[12].mxu0 }
0x209e   :  { %v1546_v53 = vadd.f32 %v1532_v26, %v3247_v17  ;;  %v2514_v18 = vpop.f32.mrb[13].mxu0  ;;  %v1537_v8 = vrot.slane %v1532_v26, 4 }
0x20a0   :  { %v1548_v7 = vrot.slane %v1546_v53, 4  ;;  %v1539_v9 = vadd.f32 %v1537_v8, %v3263_v22 }
0x20a2   :  { %1549 = vrot.lane.b32.xlu1 %v1548_v7, %s2901_s1  ;;  %v2271_v10 = vmul.f32 -1.442695, %v1539_v9 }
0x20a4   :  { %2763 = vpow2.f32 %v2271_v10 }
0x20ae   :  { %v2764_v11 = vpop.eup %2763 }
0x20af   :  { %v1543_v13 = vadd.f32 1.0, %v2764_v11 }
0x20b1   :  { %2765 = vrcp.f32 %v1543_v13 }
0x20bb   :  { %v2766_v14 = vpop.eup %2765 }
0x2114   :  { %v1550_v15 = vpop.permute.xlu1 %1549 }
0x2115   :  { %v1552_v16 = vmul.f32 %v2766_v14, %v1550_v15 }
0x2117   :  { %1554 = vrot.lane.b32.xlu0 %v1552_v16, %s2901_s1 }
0x2189   :  { %v1555_v19 = vpop.permute.xlu0 %1554 }
0x218a   :  { %v1557_v48 = vadd.f32 %v1555_v19, %v3263_v22 }
0x218c   :  { %2767 = vtanh.f32 %v1557_v48 }
0x2196   :  { %v2768_v41 = vpop.eup %2767 }
0x2197   :  { %v1560_v4 = vrot.slane %v2768_v41, 2 }
0x2199   :  { %v1562_v21 = vsub.f32 %v1459_v2, %v1560_v4 }
0x219b   :  { %v1564_v23 = vrot.slane %v1562_v21, 6 }
0x219d   :  { %1565 = vrot.lane.b32.xlu1 %v1564_v23, %s2902_s3 }
0x220f   :  { %v1566_v24 = vpop.permute.xlu1 %1565 }
0x2210   :  { %v1568_v25 = vmul.f32 %v2766_v14, %v1566_v24 }
0x2212   :  { %1570 = vrot.lane.b32.xlu0 %v1568_v25, %s2903_s26 }
0x2284   :  { %v1571_v27 = vpop.permute.xlu0 %1570 }
0x2285   :  { %v1573_v28 = vadd.f32 %v2768_v41, %v1571_v27 }
0x2287   :  { %v1575_v29 = vrot.slane %v1573_v28, 4 }
0x2289   :  { %1576 = vrot.lane.b32.xlu1 %v1575_v29, %s2901_s1 }
0x22fb   :  { %v1577_v30 = vpop.permute.xlu1 %1576 }
0x22fc   :  { %2524 = vmatmul.mubr.msk.f32.vlgmr.msra.gmra.mrb[12].mxu1 %vm233_vm9, %v1577_v30 }
0x22fd   :  { %2669 = vmatpush3.bf16.msra.mxu1 %v3218_v59  ;;  %2545 = vmatprep.mubr.msk.f32.mxu1 %vm2899_vm0, %v2900_v1 }
0x22fe   :  { %2670 = vmatprep.subr.bf16.mxu1 %v2898_v0 }
0x2301   :  { %2672 = vmatpush3.bf16.msra.mxu1 %v3221_v63 }
0x2302   :  { %2679 = vmatprep.subr.bf16.mxu1 %v2898_v0 }
0x23cf   :  { %v1646_v31 = vpop.f32.mrb[12].mxu1 }
0x23d0   :  { %v1660_v32 = vadd.f32 %v1646_v31, %v3247_v17  ;;  %v2525_v33 = vpop.f32.mrb[13].mxu1  ;;  %v1651_v35 = vrot.slane %v1646_v31, 2 }
0x23d2   :  { %v1662_v34 = vrot.slane %v1660_v32, 2  ;;  %v1653_v36 = vadd.f32 %v1651_v35, %v3263_v22 }
0x23d4   :  { %1663 = vrot.lane.b32.xlu0 %v1662_v34, %s2901_s1  ;;  %v2273_v37 = vmul.f32 -1.442695, %v1653_v36 }
0x23d6   :  { %2769 = vpow2.f32 %v2273_v37 }
0x23e0   :  { %v2770_v38 = vpop.eup %2769 }
0x23e1   :  { %v1657_v39 = vadd.f32 1.0, %v2770_v38 }
0x23e3   :  { %2771 = vrcp.f32 %v1657_v39 }
0x23ed   :  { %v2772_v42 = vpop.eup %2771 }
0x2446   :  { %v1664_v43 = vpop.permute.xlu0 %1663 }
0x2447   :  { %v1666_v44 = vmul.f32 %v2772_v42, %v1664_v43 }
0x2449   :  { %1668 = vrot.lane.b32.xlu1 %v1666_v44, %s2901_s1 }
0x24bb   :  { %v1669_v45 = vpop.permute.xlu1 %1668 }
0x24bc   :  { %v1671_v47 = vadd.f32 %v1669_v45, %v3263_v22 }
0x24be   :  { %2773 = vtanh.f32 %v1671_v47 }
0x24c8   :  { %v2774_v49 = vpop.eup %2773 }
0x24c9   :  { %v1674_v50 = vrot.slane %v2774_v49, 2 }
0x24cb   :  { %v1676_v40 = vsub.f32 %v1573_v28, %v1674_v50 }
0x24cd   :  { %v1678_v5 = vrot.slane %v1676_v40, 6 }
0x24cf   :  { %1679 = vrot.lane.b32.xlu0 %v1678_v5, %s2902_s3 }
0x2541   :  { %v1680_v51 = vpop.permute.xlu0 %1679 }
0x2542   :  { %v1682_v52 = vmul.f32 %v2772_v42, %v1680_v51 }
0x2544   :  { %1684 = vrot.lane.b32.xlu1 %v1682_v52, %s2903_s26 }
0x25b6   :  { %v1685_v54 = vpop.permute.xlu1 %1684 }
0x25b7   :  { %v1687_v55 = vadd.f32 %v2774_v49, %v1685_v54 }
0x25b9   :  { %v1689_v12 = vrot.slane %v1687_v55, 6 }
0x25bb   :  { %1690 = vrot.lane.b32.xlu0 %v1689_v12, %s2901_s1 }
0x262d   :  { %v1691_v56 = vpop.permute.xlu0 %1690 }
0x262e   :  { %2535 = vmatmul.mubr.msk.f32.vlgmr.msra.gmra.mrb[14].mxu0 %vm233_vm9, %v1691_v56 }
0x262f   :  { %2675 = vmatpush3.bf16.msra.mxu0 %v3218_v59  ;;  %2556 = vmatprep.mubr.msk.f32.mxu0 %vm2899_vm0, %v2900_v1 }
0x2630   :  { %2676 = vmatprep.subr.bf16.mxu0 %v2898_v0 }
0x2633   :  { %2678 = vmatpush3.bf16.msra.mxu0 %v3221_v63 }
0x2634   :  { %2685 = vmatprep.subr.bf16.mxu0 %v2898_v0 }
0x2701   :  { %v1760_v22 = vpop.f32.mrb[14].mxu0 }
0x2702   :  { %v1771_v46 = vadd.f32 %v1760_v22, %v3247_v17  ;;  %v2536_v57 = vpop.f32.mrb[15].mxu0  ;;  %v1764_v58 = vadd.f32 %v1760_v22, %v3261_v20 }
0x2704   :  { %1773 = vrot.lane.b32.xlu1 %v1771_v46, %s2901_s1  ;;  %v2275_v60 = vmul.f32 -1.442695, %v1764_v58 }
0x2706   :  { %2775 = vpow2.f32 %v2275_v60 }
0x2710   :  { %v2776_v61 = vpop.eup %2775 }
0x2711   :  { %v1768_v62 = vadd.f32 1.0, %v2776_v61 }
0x2713   :  { %2777 = vrcp.f32 %v1768_v62 }
0x271d   :  { %v2778_v2 = vpop.eup %2777 }
0x2776   :  { %v1774_v3 = vpop.permute.xlu1 %1773 }
0x2777   :  { %v1776_v6 = vmul.f32 %v2778_v2, %v1774_v3 }
0x2779   :  { %1778 = vrot.lane.b32.xlu0 %v1776_v6, %s2901_s1 }
0x27eb   :  { %v1779_v26 = vpop.permute.xlu0 %1778 }
0x27ec   :  { %v1781_v53 = vadd.f32 %v1779_v26, %v3261_v20 }
0x27ee   :  { %2779 = vtanh.f32 %v1781_v53 }
0x27f8   :  { %v2780_v18 = vpop.eup %2779 }
0x27f9   :  { %v1784_v7 = vrot.slane %v2780_v18, 2 }
0x27fb   :  { %v1786_v8 = vsub.f32 %v1687_v55, %v1784_v7 }
0x27fd   :  { %v1788_v9 = vrot.slane %v1786_v8, 6 }
0x27ff   :  { %1789 = vrot.lane.b32.xlu1 %v1788_v9, %s2902_s3 }
0x2871   :  { %v1790_v10 = vpop.permute.xlu1 %1789 }
0x2872   :  { %v1792_v11 = vmul.f32 %v2778_v2, %v1790_v10 }
0x2874   :  { %1794 = vrot.lane.b32.xlu0 %v1792_v11, %s2903_s26 }
0x28e6   :  { %v1795_v13 = vpop.permute.xlu0 %1794 }
0x28e7   :  { %v1797_v14 = vadd.f32 %v2780_v18, %v1795_v13 }
0x28e9   :  { %1799 = vrot.lane.b32.xlu1 %v1797_v14, %s2901_s1 }
0x295b   :  { %v1800_v15 = vpop.permute.xlu1 %1799 }
0x295c   :  { %2546 = vmatmul.mubr.msk.f32.vlgmr.msra.gmra.mrb[14].mxu1 %vm233_vm9, %v1800_v15 }
0x295d   :  { %2681 = vmatpush3.bf16.msra.mxu1 %v3218_v59  ;;  %2567 = vmatprep.mubr.msk.f32.mxu1 %vm2899_vm0, %v2900_v1 }
0x295e   :  { %2682 = vmatprep.subr.bf16.mxu1 %v2898_v0 }
0x2961   :  { %2684 = vmatpush3.bf16.msra.mxu1 %v3221_v63 }
0x2a2f   :  { %v1869_v16 = vpop.f32.mrb[14].mxu1 }
0x2a30   :  { %v1883_v19 = vadd.f32 %v1869_v16, %v3247_v17  ;;  %v2547_v48 = vpop.f32.mrb[15].mxu1  ;;  %v1874_v4 = vrot.slane %v1869_v16, 6 }
0x2a32   :  { %v1885_v41 = vrot.slane %v1883_v19, 6  ;;  %v1876_v21 = vadd.f32 %v1874_v4, %v3261_v20  ;;  %v2139_v4 = vld [vmem:[%s3403_s9] sm:$0xff] }
0x2a34   :  { %1886 = vrot.lane.b32.xlu0 %v1885_v41, %s2901_s1  ;;  %v2277_v23 = vmul.f32 -1.442695, %v1876_v21  ;;  %v2140_v21 = vld [vmem:[%s3403_s9 + $0x8] sm:$0xff] }
0x2a36   :  { %2781 = vpow2.f32 %v2277_v23  ;;  %v2141_v23 = vld [vmem:[%s3403_s9 + $0x10] sm:$0xff] }
0x2a40   :  { %v2782_v59 = vpop.eup %2781 }
0x2a41   :  { %v1880_v24 = vadd.f32 1.0, %v2782_v59  ;;  %v2142_v59 = vld [vmem:[%s3403_s9 + $0x18] sm:$0xff]  ;;  %s2904_s9 = smov [#allocation8]  }
0x2a42   :  { %s2234_s22 = sshll.u32 %s2904_s9, 4  ;;  %s2235_s22 = int_to_ptr.vmem [resolvable:$true] %s2234_s22 }
0x2a43   :  { %2783 = vrcp.f32 %v1880_v24  ;;  %v2689_v24 = vpack.c.bf16 %v2142_v59, %v2141_v23  ;;  %s2865_s6 = scalar_lea.vmem %s2235_s22, 32  ;;  %p2870_p11 = scmp.lt.s32.totalorder %s2235_s22, %s2235_s22 }
0x2a44   :  { %p2866_p10 = scmp.ne.s32.totalorder %s2235_s22, %s2865_s6  ;;  %p2871_p12 = scmp.lt.s32.totalorder %s2865_s6, %s2865_s6 }
0x2a46   :  { %p2872_p13 = por %p2871_p12, %p2870_p11 }
0x2a48   :  { %p2873_p0 = pnand %p2872_p13, %p2866_p10 }
0x2a4d   :  { %v2784_v25 = vpop.eup %2783 }
0x2aa6   :  { %v1887_v27 = vpop.permute.xlu0 %1886 }
0x2aa7   :  { %v1889_v28 = vmul.f32 %v2784_v25, %v1887_v27 }
0x2aa9   :  { %1891 = vrot.lane.b32.xlu1 %v1889_v28, %s2901_s1 }
0x2b1b   :  { %v1892_v63 = vpop.permute.xlu1 %1891 }
0x2b1c   :  { %v1894_v29 = vadd.f32 %v1892_v63, %v3261_v20 }
0x2b1e   :  { %2785 = vtanh.f32 %v1894_v29 }
0x2b28   :  { %v2786_v30 = vpop.eup %2785 }
0x2b29   :  { %v1897_v31 = vrot.slane %v2786_v30, 2 }
0x2b2b   :  { %v1899_v32 = vsub.f32 %v1797_v14, %v1897_v31  ;;  %v2282_v31 = vld [vmem:[%s3404_s10] ss:$0 sm:$0xff] }
0x2b2d   :  { %v1901_v33 = vrot.slane %v1899_v32, 6 }
0x2b2f   :  { %1902 = vrot.lane.b32.xlu0 %v1901_v33, %s2902_s3 }
0x2ba1   :  { %v1903_v34 = vpop.permute.xlu0 %1902 }
0x2ba2   :  { %v1905_v35 = vmul.f32 %v2784_v25, %v1903_v34 }
0x2ba4   :  { %1907 = vrot.lane.b32.xlu1 %v1905_v35, %s2903_s26 }
0x2c16   :  { %v1908_v36 = vpop.permute.xlu1 %1907 }
0x2c17   :  { %v1910_v37 = vadd.f32 %v2786_v30, %v1908_v36 }
0x2c19   :  { %v1912_v38 = vrot.slane %v1910_v37, 2 }
0x2c1b   :  { %1913 = vrot.lane.b32.xlu0 %v1912_v38, %s2901_s1 }
0x2c8d   :  { %v1914_v39 = vpop.permute.xlu0 %1913 }
0x2c8e   :  { %2557 = vmatmul.mubr.msk.f32.vlgmr.msra.gmra.mrb[16].mxu0 %vm233_vm9, %v1914_v39 }
0x2c8f   :  { %2578 = vmatprep.mubr.msk.f32.mxu0 %vm2899_vm0, %v2900_v1 }
0x2d61   :  { %v1983_v42 = vpop.f32.mrb[16].mxu0 }
0x2d62   :  { %v1997_v43 = vadd.f32 %v1983_v42, %v3247_v17  ;;  %v2558_v44 = vpop.f32.mrb[17].mxu0  ;;  %v1988_v47 = vrot.slane %v1983_v42, 4 }
0x2d64   :  { %v1999_v45 = vrot.slane %v1997_v43, 4  ;;  %v1990_v49 = vadd.f32 %v1988_v47, %v3261_v20 }
0x2d66   :  { %2000 = vrot.lane.b32.xlu1 %v1999_v45, %s2901_s1  ;;  %v2279_v50 = vmul.f32 -1.442695, %v1990_v49 }
0x2d68   :  { %2787 = vpow2.f32 %v2279_v50 }
0x2d72   :  { %v2788_v40 = vpop.eup %2787 }
0x2d73   :  { %v1994_v5 = vadd.f32 1.0, %v2788_v40 }
0x2d75   :  { %2789 = vrcp.f32 %v1994_v5 }
0x2d7f   :  { %v2790_v51 = vpop.eup %2789 }
0x2dd8   :  { %v2001_v52 = vpop.permute.xlu1 %2000 }
0x2dd9   :  { %v2003_v54 = vmul.f32 %v2790_v51, %v2001_v52 }
0x2ddb   :  { %2005 = vrot.lane.b32.xlu0 %v2003_v54, %s2901_s1 }
0x2e4d   :  { %v2006_v1 = vpop.permute.xlu0 %2005 }
0x2e4e   :  { %v2008_v55 = vadd.f32 %v2006_v1, %v3261_v20 }
0x2e50   :  { %2791 = vtanh.f32 %v2008_v55 }
0x2e5a   :  { %v2792_v12 = vpop.eup %2791 }
0x2e5b   :  { %v2011_v56 = vrot.slane %v2792_v12, 2 }
0x2e5d   :  { %v2013_v22 = vsub.f32 %v1910_v37, %v2011_v56 }
0x2e5f   :  { %v2015_v46 = vrot.slane %v2013_v22, 6 }
0x2e61   :  { %2016 = vrot.lane.b32.xlu1 %v2015_v46, %s2902_s3 }
0x2ed3   :  { %v2017_v57 = vpop.permute.xlu1 %2016 }
0x2ed4   :  { %v2019_v58 = vmul.f32 %v2790_v51, %v2017_v57 }
0x2ed6   :  { %2021 = vrot.lane.b32.xlu0 %v2019_v58, %s2903_s26 }
0x2f48   :  { %v2022_v60 = vpop.permute.xlu0 %2021 }
0x2f49   :  { %v2024_v61 = vadd.f32 %v2792_v12, %v2022_v60 }
0x2f4b   :  { %v2026_v62 = vrot.slane %v2024_v61, 4 }
0x2f4d   :  { %2027 = vrot.lane.b32.xlu1 %v2026_v62, %s2901_s1 }
0x2fbf   :  { %v2028_v2 = vpop.permute.xlu1 %2027 }
0x2fc0   :  { %2568 = vmatmul.mubr.msk.f32.vlgmr.msra.gmra.mrb[16].mxu1 %vm233_vm9, %v2028_v2 }
0x3093   :  { %v2097_v3 = vpop.f32.mrb[16].mxu1 }
0x3094   :  { %v2111_v6 = vadd.f32 %v2097_v3, %v3247_v17  ;;  %v2569_v26 = vpop.f32.mrb[17].mxu1  ;;  %v2102_v18 = vrot.slane %v2097_v3, 2 }
0x3096   :  { %v2113_v53 = vrot.slane %v2111_v6, 2  ;;  %v2104_v7 = vadd.f32 %v2102_v18, %v3261_v20 }
0x3098   :  { %2114 = vrot.lane.b32.xlu0 %v2113_v53, %s2901_s1  ;;  %v2281_v8 = vmul.f32 -1.442695, %v2104_v7 }
0x309a   :  { %2793 = vpow2.f32 %v2281_v8 }
0x30a4   :  { %v2794_v9 = vpop.eup %2793 }
0x30a5   :  { %v2108_v10 = vadd.f32 1.0, %v2794_v9 }
0x30a7   :  { %2795 = vrcp.f32 %v2108_v10 }
0x30b1   :  { %v2796_v11 = vpop.eup %2795 }
0x310a   :  { %v2115_v13 = vpop.permute.xlu0 %2114 }
0x310b   :  { %v2117_v14 = vmul.f32 %v2796_v11, %v2115_v13 }
0x310d   :  { %2119 = vrot.lane.b32.xlu1 %v2117_v14, %s2901_s1 }
0x317f   :  { %v2120_v15 = vpop.permute.xlu1 %2119 }
0x3180   :  { %v2122_v17 = vadd.f32 %v2120_v15, %v3261_v20  ;;  %v2686_v20 = vpack.c.bf16 %v2140_v21, %v2139_v4 }
0x3182   :  { %2797 = vtanh.f32 %v2122_v17  ;;  %2687 = vmatpush3.bf16.msra.mxu0 %v2686_v20 }
0x3183   :  { %2688 = vmatprep.subr.bf16.mxu0 %v2898_v0 }
0x3186   :  { %2690 = vmatpush3.bf16.msra.mxu0 %v2689_v24 }
0x318c   :  { %v2798_v16 = vpop.eup %2797 }
0x318d   :  { %v2125_v19 = vrot.slane %v2798_v16, 2 }
0x318f   :  { %v2127_v48 = vsub.f32 %v2024_v61, %v2125_v19 }
0x3191   :  { %v2129_v41 = vrot.slane %v2127_v48, 6 }
0x3193   :  { %2130 = vrot.lane.b32.xlu0 %v2129_v41, %s2902_s3 }
0x3205   :  { %v2131_v25 = vpop.permute.xlu0 %2130 }
0x3206   :  { %v2133_v27 = vmul.f32 %v2796_v11, %v2131_v25 }
0x3208   :  { %2135 = vrot.lane.b32.xlu1 %v2133_v27, %s2903_s26 }
0x327a   :  { %v2136_v28 = vpop.permute.xlu1 %2135 }
0x327b   :  { %v2138_v63 = vadd.f32 %v2798_v16, %v2136_v28 }
0x327d   :  { %v2151_v29 = vrot.slane %v2138_v63, 6 }
0x327f   :  { %2152 = vrot.lane.b32.xlu0 %v2151_v29, %s2901_s1 }
0x32f1   :  { %v2153_v30 = vpop.permute.xlu0 %2152 }
0x32f2   :  { %2579 = vmatmul.mubr.msk.f32.vlgmr.msra.gmra.mrb[18].mxu0 %vm233_vm9, %v2153_v30 }
0x33c5   :  { %v2222_v0 = vpop.f32.mrb[18].mxu0 }
0x33c6   :  { %v2223_v32 = vadd.f32 %v2282_v31, %v2222_v0  ;;  %v2580_v33 = vpop.f32.mrb[19].mxu0 }
0x33c8   :  { %2227 = vst.msk [vmem:[#allocation8] sm:$0x3] %vm2226_vm10, %v2223_v32 }
0x33c9   :  { %2876 = shalt.err (!%p2873_p0)
}
0x33ca   :  { %s2877_s23 = scalar_lea.hbm %s3405_s11, 32 }
0x33cb   :  { %p2878_p1 = scmp.ne.s32.totalorder %s3405_s11, %s2877_s23  ;;  %p2881_p2 = scmp.lt.u32.totalorder %s2877_s23, %s3405_s11 }
0x33cd   :  { %p2883_p3 = pnand %p2881_p2, %p2878_p1 }
0x33cf   :  { %2886 = shalt.err (!%p2883_p3)
}
0x33d0   :  { %2237 = dma.vmem_to_hbm [thread:$0]  %s2235_s22, 32, %s3405_s11, [#allocation4]  }
0x33d1   :  { %2891 = dma.done.wait [#allocation4], 32  }
0x33d2   :  { %2892 = vsyncadd [#allocation4], 4294967264 }
0x33d3   :  { %2241 = vsyncpa [#allocation3], 1 }
0x33d4   :  { %2242 = vsyncpa [#allocation6], 1 }
0x33d5   :  { %2243 = vsyncpa [#allocation4], 1 }

</bundles_post_ra>
